<compile_context>
chip_gen: v6e
topology: v6e:2x2x1
jax: 0.10.0
libtpu: 0.0.40
codegen_flags: <defaults>
</compile_context>

<pallas_src>
import math

import jax
import jax.numpy as jnp
import numpy as np
from jax.experimental import pallas as pl
from jax.experimental.pallas import tpu as pltpu

B = 2              # batch size
L_IN = 24          # sequence length (256 * L/4 = 1536 for the fc)
C_IN = 160         # flattened channels (10 * 16)
BLK = 32           # per-batch row block (24 valid seq rows + 8 zero pad rows)
C1_PAD = 256       # conv1 input channels padded 160 -> 256 (lane aligned)
CO1_PAD = 128      # conv1 output channels padded 64 -> 128 (lane aligned)
C3_OUT = 256       # conv3 output channels
L_FC = 6           # sequence positions entering the fc (24 / 2 / 2)
N_OUT = 10         # classes

# Layout invariants the roll-based "same" padding relies on (see review notes):
#  - the zero pad rows must absorb the largest conv tap roll (stride 4),
#  - the fc reads conv3 rows 0,4,...,4*(L_FC-1) only.
assert BLK % 8 == 0 and L_IN % 4 == 0
assert BLK - L_IN >= 4
assert (L_IN // 4) == L_FC and L_FC * C3_OUT == 1536


# ----------------------------------------------------------------------------
# Pallas kernel: one batch block (32 rows) per grid step, no scratch buffers
# ----------------------------------------------------------------------------
def cnn1d_kernel(x_ref, w1_ref, b1_ref, w2_ref, b2_ref, w3_ref, b3_ref,
                 wfc_ref, bfc_ref, out_ref):
    m = x_ref.shape[0]                                    # BLK rows (one batch)
    row = jax.lax.broadcasted_iota(jnp.int32, (m, 1), 0)
    valid = row < L_IN                                    # valid sequence rows

    def roll_rows(v, s):
        # result[r] = v[(r - s) % m]   (same convention as jnp.roll)
        return pltpu.roll(v, shift=s % m, axis=0)

    def conv_relu(xin, w_ref, b_ref, stride):
        # Conv1d(k=3, padding=1) at logical row-stride `stride`: one fused MXU
        # matmul over the lane-concatenated im2col [prev | cur | next].
        # Each operand is cast to bf16 BEFORE the concat: no f32 slab.
        a = jnp.concatenate(
            [roll_rows(xin, stride).astype(jnp.bfloat16),
             xin.astype(jnp.bfloat16),
             roll_rows(xin, -stride).astype(jnp.bfloat16)], axis=1)
        h = jnp.dot(a, w_ref[...], preferred_element_type=jnp.float32)
        h = jnp.maximum(h + b_ref[...], 0.0)
        # Zero the pad rows so later taps / pools see correct zero padding.
        return jnp.where(valid, h, 0.0)

    def maxpool2(h, stride):
        # MaxPool1d(kernel=2, stride=2) without decimation: pairwise max at the
        # current stride; downstream layers read every other row (2 * stride).
        return jnp.maximum(h, roll_rows(h, -stride))

    x = x_ref[...]                                        # (32, 256) f32, pads = 0
    h1 = conv_relu(x, w1_ref, b1_ref, 1)                  # (32, 128) valid @ stride 1
    h2 = conv_relu(maxpool2(h1, 1), w2_ref, b2_ref, 2)    # (32, 128) valid @ stride 2
    h3 = conv_relu(maxpool2(h2, 2), w3_ref, b3_ref, 4)    # (32, 256) valid @ stride 4

    # FC as L_FC accumulating matmuls (no (m, 1536) hcat materialization):
    # the q-th term aligns conv3 position q (row 4q) with weight block wfc[q].
    logits = jnp.dot(h3.astype(jnp.bfloat16), wfc_ref[0],
                     preferred_element_type=jnp.float32)            # (32, 10)
    for q in range(1, L_FC):
        logits = logits + jnp.dot(
            roll_rows(h3, -4 * q).astype(jnp.bfloat16), wfc_ref[q],
            preferred_element_type=jnp.float32)

    # Softmax: row 0 holds this batch's logits; rows 1..7 carry finite garbage
    # that the wrapper discards.  Exact reciprocal so probabilities sum to 1.
    lg = logits[:8, :] + bfc_ref[...]                                # (8, 10)
    mx = jnp.max(lg, axis=1, keepdims=True)
    e = jnp.exp(lg - mx)
    inv = pl.reciprocal(jnp.sum(e, axis=1, keepdims=True), approx=False)
    out_ref[0] = (e * inv).astype(out_ref.dtype)


# ----------------------------------------------------------------------------
# One-time parameter repacking (hoisted out of the per-call path)
# ----------------------------------------------------------------------------
def pack_params(params):
    """Repack PyTorch-layout parameters into kernel layout. Call ONCE."""
    (w1, b1, w2, b2, w3, b3, wfc, bfc) = params

    def prep_conv(w, b, cin_pad, cout_pad):
        # PyTorch conv weight (Cout, Cin, 3) -> fused im2col weight
        # (3*cin_pad, cout_pad) in [prev|cur|next] row order, zero-padded, bf16.
        cout, cin, k = w.shape
        t = jnp.transpose(w, (2, 1, 0))                   # (3, Cin, Cout)
        tp = jnp.zeros((k, cin_pad, cout_pad), jnp.float32)
        tp = tp.at[:, :cin, :cout].set(t)
        wcat = tp.reshape(k * cin_pad, cout_pad).astype(jnp.bfloat16)
        bp = jnp.zeros((1, cout_pad), jnp.float32).at[0, :cout].set(b)
        return wcat, bp

    w1cat, b1p = prep_conv(w1, b1, C1_PAD, CO1_PAD)       # (768, 128)
    w2cat, b2p = prep_conv(w2, b2, CO1_PAD, 128)          # (384, 128)
    w3cat, b3p = prep_conv(w3, b3, 128, C3_OUT)           # (384, 256)
    # PyTorch flatten index = channel*6 + pos; kernel FC term q multiplies the
    # channel vector at position q, so pre-split into (6, 256, 10) blocks.
    wfck = jnp.transpose(wfc.reshape(N_OUT, C3_OUT, L_FC),
                         (2, 1, 0)).astype(jnp.bfloat16)  # (6, 256, 10)
    bfck = bfc.reshape(1, N_OUT).astype(jnp.float32)
    return (w1cat, b1p, w2cat, b2p, w3cat, b3p, wfck, bfck)


# ----------------------------------------------------------------------------
# Forward wrapper (jitted): per-call work is only the x layout + pallas_call
# ----------------------------------------------------------------------------
@jax.jit
def cnn1d_forward(x, packed):
    """x: (B, 24, 10, 16) float32 -> (B, 10) softmax probabilities."""
    (w1cat, b1p, w2cat, b2p, w3cat, b3p, wfck, bfck) = packed
    bsz = x.shape[0]

    # Flatten(start_dim=2) + permute is a reshape to (B, L, C); stack the batch
    # along rows as 32-row blocks (24 valid + 8 zero pad), pad channels 160->256.
    x_lc = x.reshape(bsz, L_IN, C_IN).astype(jnp.float32)
    x_pad = jnp.zeros((bsz, BLK, C1_PAD), jnp.float32)
    x_pad = x_pad.at[:, :L_IN, :C_IN].set(x_lc)
    x_stack = x_pad.reshape(bsz * BLK, C1_PAD)

    args = (x_stack, w1cat, b1p, w2cat, b2p, w3cat, b3p, wfck, bfck)

    def const_spec(a):
        # Full-array block, same block index for every grid step -> stays
        # resident in VMEM across the batch grid (no re-DMA).
        n = a.ndim
        return pl.BlockSpec(a.shape, lambda b, _n=n: (0,) * _n)

    in_specs = [pl.BlockSpec((BLK, C1_PAD), lambda b: (b, 0))]
    in_specs += [const_spec(a) for a in args[1:]]

    macs = bsz * BLK * (3 * C1_PAD * CO1_PAD + 3 * CO1_PAD * 128
                        + 3 * 128 * C3_OUT + L_FC * C3_OUT * N_OUT)
    bytes_accessed = (sum(int(a.size) * a.dtype.itemsize for a in args)
                      + bsz * 8 * N_OUT * 4)
    cost = pl.CostEstimate(flops=2 * macs,
                           transcendentals=bsz * 8 * N_OUT,
                           bytes_accessed=bytes_accessed)

    out = pl.pallas_call(
        cnn1d_kernel,
        out_shape=jax.ShapeDtypeStruct((bsz, 8, N_OUT), jnp.float32),
        grid_spec=pltpu.PrefetchScalarGridSpec(
            num_scalar_prefetch=0,
            grid=(bsz,),
            in_specs=in_specs,
            out_specs=pl.BlockSpec((1, 8, N_OUT), lambda b: (b, 0, 0)),
        ),
        compiler_params=pltpu.CompilerParams(
            dimension_semantics=("parallel",)),
        cost_estimate=cost,
    )(*args)
    # Row 0 of each batch's (8, 10) output block holds the probabilities.
    return out[:, 0, :]


# ----------------------------------------------------------------------------
# Pure-JAX reference (mirrors the PyTorch graph, NCL layout, all f32)
# ----------------------------------------------------------------------------
def reference_forward(x, params):
    (w1, b1, w2, b2, w3, b3, wfc, bfc) = params
    bsz = x.shape[0]
    h = x.reshape(bsz, L_IN, C_IN)                  # Flatten(start_dim=2)
    h = jnp.transpose(h, (0, 2, 1))                 # (B, 160, 24)

    def conv(h, w, b):
        y = jax.lax.conv_general_dilated(
            h, w, window_strides=(1,), padding=((1, 1),),
            dimension_numbers=('NCH', 'OIH', 'NCH'))
        return jax.nn.relu(y + b[None, :, None])

    def pool(h):
        bb, c, ll = h.shape
        return jnp.max(h.reshape(bb, c, ll // 2, 2), axis=-1)

    h = pool(conv(h, w1, b1))
    h = pool(conv(h, w2, b2))
    h = conv(h, w3, b3)
    h = h.reshape(bsz, -1)                          # (B, 1536)
    logits = h @ wfc.T + bfc
    return jax.nn.softmax(logits, axis=1)


# ----------------------------------------------------------------------------
def make_params():
    keys = jax.random.split(jax.random.PRNGKey(42), 8)

    def init(k, shape, fan_in):
        return jax.random.normal(k, shape, jnp.float32) / math.sqrt(fan_in)

    w1 = init(keys[0], (64, 160, 3), 160 * 3)
    b1 = init(keys[1], (64,), 160 * 3)
    w2 = init(keys[2], (128, 64, 3), 64 * 3)
    b2 = init(keys[3], (128,), 64 * 3)
    w3 = init(keys[4], (256, 128, 3), 128 * 3)
    b3 = init(keys[5], (256,), 128 * 3)
    wfc = init(keys[6], (10, 1536), 1536)
    bfc = init(keys[7], (10,), 1536)
    return (w1, b1, w2, b2, w3, b3, wfc, bfc)


if __name__ == "__main__":
    params = make_params()
    # One-time weight repack (hoisted out of the per-call path).
    packed = jax.block_until_ready(pack_params(params))

    # Input: (B, 24, 10, 16) so that Flatten(start_dim=2) -> (B, 24, 160).
    x = jax.random.normal(jax.random.PRNGKey(0), (B, L_IN, 10, 16), jnp.float32)

    out = jax.block_until_ready(cnn1d_forward(x, packed))
    ref = jax.block_until_ready(reference_forward(x, params))

    # bf16 MXU operands (f32 accumulation) => loosened tolerance vs f32 reference.
    np.testing.assert_allclose(np.asarray(out), np.asarray(ref),
                               rtol=2e-2, atol=2e-2)
    assert out.shape == (B, 10)
    print("KERNEL_OK")
</pallas_src>

<mosaic_0001>
module attributes {stable_mosaic.version = 11 : i64} {
  func.func @cnn1d_kernel(%arg0: i32, %arg1: memref<32x256xf32, #tpu.memory_space<vmem>>, %arg2: memref<768x128xbf16, #tpu.memory_space<vmem>>, %arg3: memref<1x128xf32, #tpu.memory_space<vmem>>, %arg4: memref<384x128xbf16, #tpu.memory_space<vmem>>, %arg5: memref<1x128xf32, #tpu.memory_space<vmem>>, %arg6: memref<384x256xbf16, #tpu.memory_space<vmem>>, %arg7: memref<1x256xf32, #tpu.memory_space<vmem>>, %arg8: memref<6x256x10xbf16, #tpu.memory_space<vmem>>, %arg9: memref<1x10xf32, #tpu.memory_space<vmem>>, %arg10: memref<1x8x10xf32, #tpu.memory_space<vmem>>) attributes {dimension_semantics = [#tpu.dimension_semantics<parallel>], iteration_bounds = array<i64: 2>, scalar_prefetch = 0 : i64, scratch_operands = 0 : i64, tpu.core_type = #tpu.core_type<tc>, window_params = [{transform_indices = @transform_0, window_bounds = array<i64: 32, 256>}, {pipeline_mode = #tpu.pipeline_mode<synchronous>, transform_indices = @transform_1, window_bounds = array<i64: 768, 128>}, {pipeline_mode = #tpu.pipeline_mode<synchronous>, transform_indices = @transform_2, window_bounds = array<i64: 1, 128>}, {pipeline_mode = #tpu.pipeline_mode<synchronous>, transform_indices = @transform_3, window_bounds = array<i64: 384, 128>}, {pipeline_mode = #tpu.pipeline_mode<synchronous>, transform_indices = @transform_4, window_bounds = array<i64: 1, 128>}, {pipeline_mode = #tpu.pipeline_mode<synchronous>, transform_indices = @transform_5, window_bounds = array<i64: 384, 256>}, {pipeline_mode = #tpu.pipeline_mode<synchronous>, transform_indices = @transform_6, window_bounds = array<i64: 1, 256>}, {pipeline_mode = #tpu.pipeline_mode<synchronous>, transform_indices = @transform_7, window_bounds = array<i64: 6, 256, 10>}, {pipeline_mode = #tpu.pipeline_mode<synchronous>, transform_indices = @transform_8, window_bounds = array<i64: 1, 10>}, {transform_indices = @transform_9, window_bounds = array<i64: 1, 8, 10>}]} {
    %0 = tpu.iota {dimensions = array<i32: 0>} : vector<32x1xi32>
    %c24_i32 = arith.constant 24 : i32
    %1 = vector.broadcast %c24_i32 : i32 to vector<32x1xi32>
    %2 = arith.cmpi slt, %0, %1 : vector<32x1xi32>
    %c0 = arith.constant 0 : index
    %c0_0 = arith.constant 0 : index
    %3 = vector.load %arg1[%c0, %c0_0] : memref<32x256xf32, #tpu.memory_space<vmem>>, vector<32x256xf32>
    %c1_i32 = arith.constant 1 : i32
    %4 = tpu.dynamic_rotate %3 by %c1_i32 dim 0 : vector<32x256xf32>, i32 -> vector<32x256xf32>
    %5 = arith.truncf %4 : vector<32x256xf32> to vector<32x256xbf16>
    %6 = arith.truncf %3 : vector<32x256xf32> to vector<32x256xbf16>
    %c31_i32 = arith.constant 31 : i32
    %7 = tpu.dynamic_rotate %3 by %c31_i32 dim 0 : vector<32x256xf32>, i32 -> vector<32x256xf32>
    %8 = arith.truncf %7 : vector<32x256xf32> to vector<32x256xbf16>
    %9 = tpu.concatenate %5, %6, %8 in 1 : vector<32x256xbf16>, vector<32x256xbf16>, vector<32x256xbf16> -> vector<32x768xbf16>
    %c0_1 = arith.constant 0 : index
    %c0_2 = arith.constant 0 : index
    %10 = vector.load %arg2[%c0_1, %c0_2] : memref<768x128xbf16, #tpu.memory_space<vmem>>, vector<768x128xbf16>
    %cst = arith.constant dense<0.000000e+00> : vector<32x128xf32>
    %11 = tpu.matmul %9, %10, %cst {dimension_numbers = #tpu.dot_dimension_numbers<[1], [0], [0], [1], [0, 0, 1, 1], [], []>} : vector<32x768xbf16>, vector<768x128xbf16>, vector<32x128xf32> -> vector<32x128xf32>
    %c0_3 = arith.constant 0 : index
    %c0_4 = arith.constant 0 : index
    %12 = vector.load %arg3[%c0_3, %c0_4] : memref<1x128xf32, #tpu.memory_space<vmem>>, vector<1x128xf32>
    %13 = vector.broadcast %12 : vector<1x128xf32> to vector<32x128xf32>
    %14 = arith.addf %11, %13 : vector<32x128xf32>
    %cst_5 = arith.constant 0.000000e+00 : f32
    %15 = vector.broadcast %cst_5 : f32 to vector<32x128xf32>
    %16 = arith.maximumf %14, %15 : vector<32x128xf32>
    %cst_6 = arith.constant 0.000000e+00 : f32
    %17 = vector.shape_cast %2 : vector<32x1xi1> to vector<32x1xi1>
    %18 = vector.broadcast %17 : vector<32x1xi1> to vector<32x128xi1>
    %19 = vector.broadcast %cst_6 : f32 to vector<32x128xf32>
    %20 = arith.select %18, %16, %19 : vector<32x128xi1>, vector<32x128xf32>
    %c31_i32_7 = arith.constant 31 : i32
    %21 = tpu.dynamic_rotate %20 by %c31_i32_7 dim 0 : vector<32x128xf32>, i32 -> vector<32x128xf32>
    %22 = arith.maximumf %20, %21 : vector<32x128xf32>
    %c2_i32 = arith.constant 2 : i32
    %23 = tpu.dynamic_rotate %22 by %c2_i32 dim 0 : vector<32x128xf32>, i32 -> vector<32x128xf32>
    %24 = arith.truncf %23 : vector<32x128xf32> to vector<32x128xbf16>
    %25 = arith.truncf %22 : vector<32x128xf32> to vector<32x128xbf16>
    %c30_i32 = arith.constant 30 : i32
    %26 = tpu.dynamic_rotate %22 by %c30_i32 dim 0 : vector<32x128xf32>, i32 -> vector<32x128xf32>
    %27 = arith.truncf %26 : vector<32x128xf32> to vector<32x128xbf16>
    %28 = tpu.concatenate %24, %25, %27 in 1 : vector<32x128xbf16>, vector<32x128xbf16>, vector<32x128xbf16> -> vector<32x384xbf16>
    %c0_8 = arith.constant 0 : index
    %c0_9 = arith.constant 0 : index
    %29 = vector.load %arg4[%c0_8, %c0_9] : memref<384x128xbf16, #tpu.memory_space<vmem>>, vector<384x128xbf16>
    %cst_10 = arith.constant dense<0.000000e+00> : vector<32x128xf32>
    %30 = tpu.matmul %28, %29, %cst_10 {dimension_numbers = #tpu.dot_dimension_numbers<[1], [0], [0], [1], [0, 0, 1, 1], [], []>} : vector<32x384xbf16>, vector<384x128xbf16>, vector<32x128xf32> -> vector<32x128xf32>
    %c0_11 = arith.constant 0 : index
    %c0_12 = arith.constant 0 : index
    %31 = vector.load %arg5[%c0_11, %c0_12] : memref<1x128xf32, #tpu.memory_space<vmem>>, vector<1x128xf32>
    %32 = vector.broadcast %31 : vector<1x128xf32> to vector<32x128xf32>
    %33 = arith.addf %30, %32 : vector<32x128xf32>
    %cst_13 = arith.constant 0.000000e+00 : f32
    %34 = vector.broadcast %cst_13 : f32 to vector<32x128xf32>
    %35 = arith.maximumf %33, %34 : vector<32x128xf32>
    %cst_14 = arith.constant 0.000000e+00 : f32
    %36 = vector.shape_cast %2 : vector<32x1xi1> to vector<32x1xi1>
    %37 = vector.broadcast %36 : vector<32x1xi1> to vector<32x128xi1>
    %38 = vector.broadcast %cst_14 : f32 to vector<32x128xf32>
    %39 = arith.select %37, %35, %38 : vector<32x128xi1>, vector<32x128xf32>
    %c30_i32_15 = arith.constant 30 : i32
    %40 = tpu.dynamic_rotate %39 by %c30_i32_15 dim 0 : vector<32x128xf32>, i32 -> vector<32x128xf32>
    %41 = arith.maximumf %39, %40 : vector<32x128xf32>
    %c4_i32 = arith.constant 4 : i32
    %42 = tpu.dynamic_rotate %41 by %c4_i32 dim 0 : vector<32x128xf32>, i32 -> vector<32x128xf32>
    %43 = arith.truncf %42 : vector<32x128xf32> to vector<32x128xbf16>
    %44 = arith.truncf %41 : vector<32x128xf32> to vector<32x128xbf16>
    %c28_i32 = arith.constant 28 : i32
    %45 = tpu.dynamic_rotate %41 by %c28_i32 dim 0 : vector<32x128xf32>, i32 -> vector<32x128xf32>
    %46 = arith.truncf %45 : vector<32x128xf32> to vector<32x128xbf16>
    %47 = tpu.concatenate %43, %44, %46 in 1 : vector<32x128xbf16>, vector<32x128xbf16>, vector<32x128xbf16> -> vector<32x384xbf16>
    %c0_16 = arith.constant 0 : index
    %c0_17 = arith.constant 0 : index
    %48 = vector.load %arg6[%c0_16, %c0_17] : memref<384x256xbf16, #tpu.memory_space<vmem>>, vector<384x256xbf16>
    %cst_18 = arith.constant dense<0.000000e+00> : vector<32x256xf32>
    %49 = tpu.matmul %47, %48, %cst_18 {dimension_numbers = #tpu.dot_dimension_numbers<[1], [0], [0], [1], [0, 0, 1, 1], [], []>} : vector<32x384xbf16>, vector<384x256xbf16>, vector<32x256xf32> -> vector<32x256xf32>
    %c0_19 = arith.constant 0 : index
    %c0_20 = arith.constant 0 : index
    %50 = vector.load %arg7[%c0_19, %c0_20] : memref<1x256xf32, #tpu.memory_space<vmem>>, vector<1x256xf32>
    %51 = vector.broadcast %50 : vector<1x256xf32> to vector<32x256xf32>
    %52 = arith.addf %49, %51 : vector<32x256xf32>
    %cst_21 = arith.constant 0.000000e+00 : f32
    %53 = vector.broadcast %cst_21 : f32 to vector<32x256xf32>
    %54 = arith.maximumf %52, %53 : vector<32x256xf32>
    %cst_22 = arith.constant 0.000000e+00 : f32
    %55 = vector.shape_cast %2 : vector<32x1xi1> to vector<32x1xi1>
    %56 = vector.broadcast %55 : vector<32x1xi1> to vector<32x256xi1>
    %57 = vector.broadcast %cst_22 : f32 to vector<32x256xf32>
    %58 = arith.select %56, %54, %57 : vector<32x256xi1>, vector<32x256xf32>
    %59 = arith.truncf %58 : vector<32x256xf32> to vector<32x256xbf16>
    %c0_23 = arith.constant 0 : index
    %c0_24 = arith.constant 0 : index
    %c0_25 = arith.constant 0 : index
    %60 = vector.load %arg8[%c0_23, %c0_24, %c0_25] : memref<6x256x10xbf16, #tpu.memory_space<vmem>>, vector<1x256x10xbf16>
    %61 = vector.shape_cast %60 : vector<1x256x10xbf16> to vector<256x10xbf16>
    %cst_26 = arith.constant dense<0.000000e+00> : vector<32x10xf32>
    %62 = tpu.matmul %59, %61, %cst_26 {dimension_numbers = #tpu.dot_dimension_numbers<[1], [0], [0], [1], [0, 0, 1, 1], [], []>} : vector<32x256xbf16>, vector<256x10xbf16>, vector<32x10xf32> -> vector<32x10xf32>
    %c28_i32_27 = arith.constant 28 : i32
    %63 = tpu.dynamic_rotate %58 by %c28_i32_27 dim 0 : vector<32x256xf32>, i32 -> vector<32x256xf32>
    %64 = arith.truncf %63 : vector<32x256xf32> to vector<32x256xbf16>
    %c1 = arith.constant 1 : index
    %c0_28 = arith.constant 0 : index
    %c0_29 = arith.constant 0 : index
    %65 = vector.load %arg8[%c1, %c0_28, %c0_29] : memref<6x256x10xbf16, #tpu.memory_space<vmem>>, vector<1x256x10xbf16>
    %66 = vector.shape_cast %65 : vector<1x256x10xbf16> to vector<256x10xbf16>
    %cst_30 = arith.constant dense<0.000000e+00> : vector<32x10xf32>
    %67 = tpu.matmul %64, %66, %cst_30 {dimension_numbers = #tpu.dot_dimension_numbers<[1], [0], [0], [1], [0, 0, 1, 1], [], []>} : vector<32x256xbf16>, vector<256x10xbf16>, vector<32x10xf32> -> vector<32x10xf32>
    %68 = arith.addf %62, %67 : vector<32x10xf32>
    %c24_i32_31 = arith.constant 24 : i32
    %69 = tpu.dynamic_rotate %58 by %c24_i32_31 dim 0 : vector<32x256xf32>, i32 -> vector<32x256xf32>
    %70 = arith.truncf %69 : vector<32x256xf32> to vector<32x256xbf16>
    %c2 = arith.constant 2 : index
    %c0_32 = arith.constant 0 : index
    %c0_33 = arith.constant 0 : index
    %71 = vector.load %arg8[%c2, %c0_32, %c0_33] : memref<6x256x10xbf16, #tpu.memory_space<vmem>>, vector<1x256x10xbf16>
    %72 = vector.shape_cast %71 : vector<1x256x10xbf16> to vector<256x10xbf16>
    %cst_34 = arith.constant dense<0.000000e+00> : vector<32x10xf32>
    %73 = tpu.matmul %70, %72, %cst_34 {dimension_numbers = #tpu.dot_dimension_numbers<[1], [0], [0], [1], [0, 0, 1, 1], [], []>} : vector<32x256xbf16>, vector<256x10xbf16>, vector<32x10xf32> -> vector<32x10xf32>
    %74 = arith.addf %68, %73 : vector<32x10xf32>
    %c20_i32 = arith.constant 20 : i32
    %75 = tpu.dynamic_rotate %58 by %c20_i32 dim 0 : vector<32x256xf32>, i32 -> vector<32x256xf32>
    %76 = arith.truncf %75 : vector<32x256xf32> to vector<32x256xbf16>
    %c3 = arith.constant 3 : index
    %c0_35 = arith.constant 0 : index
    %c0_36 = arith.constant 0 : index
    %77 = vector.load %arg8[%c3, %c0_35, %c0_36] : memref<6x256x10xbf16, #tpu.memory_space<vmem>>, vector<1x256x10xbf16>
    %78 = vector.shape_cast %77 : vector<1x256x10xbf16> to vector<256x10xbf16>
    %cst_37 = arith.constant dense<0.000000e+00> : vector<32x10xf32>
    %79 = tpu.matmul %76, %78, %cst_37 {dimension_numbers = #tpu.dot_dimension_numbers<[1], [0], [0], [1], [0, 0, 1, 1], [], []>} : vector<32x256xbf16>, vector<256x10xbf16>, vector<32x10xf32> -> vector<32x10xf32>
    %80 = arith.addf %74, %79 : vector<32x10xf32>
    %c16_i32 = arith.constant 16 : i32
    %81 = tpu.dynamic_rotate %58 by %c16_i32 dim 0 : vector<32x256xf32>, i32 -> vector<32x256xf32>
    %82 = arith.truncf %81 : vector<32x256xf32> to vector<32x256xbf16>
    %c4 = arith.constant 4 : index
    %c0_38 = arith.constant 0 : index
    %c0_39 = arith.constant 0 : index
    %83 = vector.load %arg8[%c4, %c0_38, %c0_39] : memref<6x256x10xbf16, #tpu.memory_space<vmem>>, vector<1x256x10xbf16>
    %84 = vector.shape_cast %83 : vector<1x256x10xbf16> to vector<256x10xbf16>
    %cst_40 = arith.constant dense<0.000000e+00> : vector<32x10xf32>
    %85 = tpu.matmul %82, %84, %cst_40 {dimension_numbers = #tpu.dot_dimension_numbers<[1], [0], [0], [1], [0, 0, 1, 1], [], []>} : vector<32x256xbf16>, vector<256x10xbf16>, vector<32x10xf32> -> vector<32x10xf32>
    %86 = arith.addf %80, %85 : vector<32x10xf32>
    %c12_i32 = arith.constant 12 : i32
    %87 = tpu.dynamic_rotate %58 by %c12_i32 dim 0 : vector<32x256xf32>, i32 -> vector<32x256xf32>
    %88 = arith.truncf %87 : vector<32x256xf32> to vector<32x256xbf16>
    %c5 = arith.constant 5 : index
    %c0_41 = arith.constant 0 : index
    %c0_42 = arith.constant 0 : index
    %89 = vector.load %arg8[%c5, %c0_41, %c0_42] : memref<6x256x10xbf16, #tpu.memory_space<vmem>>, vector<1x256x10xbf16>
    %90 = vector.shape_cast %89 : vector<1x256x10xbf16> to vector<256x10xbf16>
    %cst_43 = arith.constant dense<0.000000e+00> : vector<32x10xf32>
    %91 = tpu.matmul %88, %90, %cst_43 {dimension_numbers = #tpu.dot_dimension_numbers<[1], [0], [0], [1], [0, 0, 1, 1], [], []>} : vector<32x256xbf16>, vector<256x10xbf16>, vector<32x10xf32> -> vector<32x10xf32>
    %92 = arith.addf %86, %91 : vector<32x10xf32>
    %93 = vector.extract_strided_slice %92 {offsets = [0, 0], sizes = [8, 10], strides = [1, 1]} : vector<32x10xf32> to vector<8x10xf32>
    %c0_44 = arith.constant 0 : index
    %c0_45 = arith.constant 0 : index
    %94 = vector.load %arg9[%c0_44, %c0_45] : memref<1x10xf32, #tpu.memory_space<vmem>>, vector<1x10xf32>
    %95 = vector.broadcast %94 : vector<1x10xf32> to vector<8x10xf32>
    %96 = arith.addf %93, %95 : vector<8x10xf32>
    %cst_46 = arith.constant dense<0xFF800000> : vector<8xf32>
    %97 = vector.multi_reduction <maximumf>, %96, %cst_46 [1] : vector<8x10xf32> to vector<8xf32>
    %98 = vector.shape_cast %97 : vector<8xf32> to vector<8x1xf32>
    %99 = vector.broadcast %98 : vector<8x1xf32> to vector<8x10xf32>
    %100 = arith.subf %96, %99 : vector<8x10xf32>
    %101 = math.exp %100 : vector<8x10xf32>
    %cst_47 = arith.constant dense<0.000000e+00> : vector<8xf32>
    %102 = vector.multi_reduction <add>, %101, %cst_47 [1] : vector<8x10xf32> to vector<8xf32>
    %103 = vector.shape_cast %102 : vector<8xf32> to vector<8x1xf32>
    %104 = tpu.reciprocal %103 : vector<8x1xf32> -> vector<8x1xf32>
    %105 = vector.broadcast %104 : vector<8x1xf32> to vector<8x10xf32>
    %106 = arith.mulf %101, %105 : vector<8x10xf32>
    %c0_48 = arith.constant 0 : index
    %c0_49 = arith.constant 0 : index
    %c0_50 = arith.constant 0 : index
    %107 = vector.load %arg10[%c0_48, %c0_49, %c0_50] : memref<1x8x10xf32, #tpu.memory_space<vmem>>, vector<1x8x10xf32>
    %108 = vector.shape_cast %107 : vector<1x8x10xf32> to vector<8x10xf32>
    %109 = vector.shape_cast %106 : vector<8x10xf32> to vector<1x8x10xf32>
    tpu.vector_store %arg10[%c0_48, %c0_49, %c0_50], %109 {strides = array<i32>} : memref<1x8x10xf32, #tpu.memory_space<vmem>>, vector<1x8x10xf32>,
    return
  }
  func.func @transform_0(%arg0: i32) -> (i32, i32) {
    %c0_i32 = arith.constant 0 : i32
    %c0_i32_0 = arith.constant 0 : i32
    return %arg0, %c0_i32 : i32, i32
  }
  func.func @transform_1(%arg0: i32) -> (i32, i32) {
    %c0_i32 = arith.constant 0 : i32
    %c0_i32_0 = arith.constant 0 : i32
    %c0_i32_1 = arith.constant 0 : i32
    return %c0_i32, %c0_i32_0 : i32, i32
  }
  func.func @transform_2(%arg0: i32) -> (i32, i32) {
    %c0_i32 = arith.constant 0 : i32
    %c0_i32_0 = arith.constant 0 : i32
    %c0_i32_1 = arith.constant 0 : i32
    return %c0_i32, %c0_i32_0 : i32, i32
  }
  func.func @transform_3(%arg0: i32) -> (i32, i32) {
    %c0_i32 = arith.constant 0 : i32
    %c0_i32_0 = arith.constant 0 : i32
    %c0_i32_1 = arith.constant 0 : i32
    return %c0_i32, %c0_i32_0 : i32, i32
  }
  func.func @transform_4(%arg0: i32) -> (i32, i32) {
    %c0_i32 = arith.constant 0 : i32
    %c0_i32_0 = arith.constant 0 : i32
    %c0_i32_1 = arith.constant 0 : i32
    return %c0_i32, %c0_i32_0 : i32, i32
  }
  func.func @transform_5(%arg0: i32) -> (i32, i32) {
    %c0_i32 = arith.constant 0 : i32
    %c0_i32_0 = arith.constant 0 : i32
    %c0_i32_1 = arith.constant 0 : i32
    return %c0_i32, %c0_i32_0 : i32, i32
  }
  func.func @transform_6(%arg0: i32) -> (i32, i32) {
    %c0_i32 = arith.constant 0 : i32
    %c0_i32_0 = arith.constant 0 : i32
    %c0_i32_1 = arith.constant 0 : i32
    return %c0_i32, %c0_i32_0 : i32, i32
  }
  func.func @transform_7(%arg0: i32) -> (i32, i32, i32) {
    %c0_i32 = arith.constant 0 : i32
    %c0_i32_0 = arith.constant 0 : i32
    %c0_i32_1 = arith.constant 0 : i32
    %c0_i32_2 = arith.constant 0 : i32
    return %c0_i32, %c0_i32_0, %c0_i32_1 : i32, i32, i32
  }
  func.func @transform_8(%arg0: i32) -> (i32, i32) {
    %c0_i32 = arith.constant 0 : i32
    %c0_i32_0 = arith.constant 0 : i32
    %c0_i32_1 = arith.constant 0 : i32
    return %c0_i32, %c0_i32_0 : i32, i32
  }
  func.func @transform_9(%arg0: i32) -> (i32, i32, i32) {
    %c0_i32 = arith.constant 0 : i32
    %c0_i32_0 = arith.constant 0 : i32
    %c0_i32_1 = arith.constant 0 : i32
    return %arg0, %c0_i32, %c0_i32_0 : i32, i32, i32
  }
}

</mosaic_0001>

<bundles_post_ra>
// kernel: cnn1d_forward.1
= control target key start
LH: loop header
LB: loop body
LE: loop exit
PB: predicated region body
PF: predicated region fallthrough
CT: control target
= control target key end

     0   :  { %s3918_s30 = smov 0   ;;  %s4821_s0 = inlined_call_operand.vmem [shape: f32[64,256], index: 0, kind: input, shape index: {}]   ;;  %s4822_s1 = inlined_call_operand.vmem [shape: bf16[768,128], index: 1, kind: input, shape index: {}]   ;;  %s4823_s2 = inlined_call_operand.vmem [shape: f32[1,128], index: 2, kind: input, shape index: {}]   ;;  %s4824_s3 = inlined_call_operand.vmem [shape: bf16[384,128], index: 3, kind: input, shape index: {}]   ;;  %s4825_s4 = inlined_call_operand.vmem [shape: f32[1,128], index: 4, kind: input, shape index: {}]   ;;  %s4826_s5 = inlined_call_operand.vmem [shape: bf16[384,256], index: 5, kind: input, shape index: {}]   ;;  %s4827_s6 = inlined_call_operand.vmem [shape: f32[1,256], index: 6, kind: input, shape index: {}]   ;;  %s4828_s7 = inlined_call_operand.vmem [shape: bf16[6,256,10], index: 7, kind: input, shape index: {}]   ;;  %s4829_s8 = inlined_call_operand.vmem [shape: f32[1,10], index: 8, kind: input, shape index: {}]   ;;  %s4830_s9 = inlined_call_operand.vmem [shape: f32[2,8,10], index: 9, kind: output, shape index: {}]  }
   0x1 LB: > { %s3924_s10 = sadd.s32 4294967295, %s3864_s30   ;;  %p2907_p0 = scmp.ge.s32.totalorder %s3864_s30, 1  ;;  %s3864_s30 = sphi %s3918_s30, %s19_s30  }
   0x2   : > { %p289_p1 = scmp.lt.s32.totalorder %s3864_s30, 3 }
   0x4   : > { %p290_p2 = pnand %p2907_p0, %p289_p1 }
   0x5   : > { %s2908_s22 = sshll.u32 (!%p290_p2), %s3924_s10, 2  ;;  %p332_p4 = scmp.lt.s32.totalorder (!%p290_p2), %s3924_s10, 1 }
   0x6   : > { %293 = sbr.rel (%p290_p2) target bundleno = 1312 (0x520), region = 56  ;;  %p326_p3 = scmp.lt.s32.totalorder (!%p290_p2), %s2908_s22, 7 }
   0xb   : > { %v3614_v0 = vld [vmem:[%s4822_s1 + $0x78] sm:$0xff]   ;;  %v3618_v4 = vld [vmem:[%s4822_s1 + $0x70] sm:$0xff]   ;;  %v3622_v8 = vld [vmem:[%s4822_s1 + $0x68] sm:$0xff]   ;;  %s4832_s22 = smov (!%p326_p3, %s2908_s22), 7  ;;  %v337_v24 = vlaneseq  ;;  %vm2837_vm5 = vcmask 80896   ;;  %s4834_s10 = smov (!%p332_p4, %s3924_s10), 1 }
   0xc   : > { %v3615_v1 = vld [vmem:[%s4822_s1 + $0x38] sm:$0xff]   ;;  %3294 = vmatprep.subr.bf16.mxu0 %v3614_v0  ;;  %v3619_v5 = vld [vmem:[%s4822_s1 + $0x30] sm:$0xff]   ;;  %v3623_v9 = vld [vmem:[%s4822_s1 + $0x28] sm:$0xff]   ;;  %s3293_s27 = sshll.u32 %s4832_s22, 4  ;;  %s2911_s19 = sshll.u32 %s4834_s10, 3 }
   0xd   : > { %v3616_v2 = vld [vmem:[%s4822_s1 + $0xf8] sm:$0xff]   ;;  %3295 = vmatpush3.bf16.msra.mxu0 %v3615_v1  ;;  %v3620_v6 = vld [vmem:[%s4822_s1 + $0xf0] sm:$0xff]   ;;  %v3624_v10 = vld [vmem:[%s4822_s1 + $0xe8] sm:$0xff]   ;;  %v4013_v29 = vshrl.u32 %v337_v24, 7  ;;  %s4021_s22 = scalar_lea.vmem %s4821_s0, %s3293_s27  ;;  %s335_s23 = scalar_lea.vmem %s4830_s9, %s2911_s19 }
   0xe   : > { %v3617_v3 = vld [vmem:[%s4822_s1 + $0xb8] sm:$0xff]   ;;  %3322 = vmatprep.subr.bf16.mxu1 %v3616_v2  ;;  %3296 = vmatprep.subr.bf16.mxu0 %v3618_v4  ;;  %v3621_v7 = vld [vmem:[%s4822_s1 + $0xb0] sm:$0xff]   ;;  %v3625_v11 = vld [vmem:[%s4822_s1 + $0xa8] sm:$0xff]  }
   0xf   : > { %3323 = vmatpush3.bf16.msra.mxu1 %v3617_v3  ;;  %v3626_v12 = vld [vmem:[%s4822_s1 + $0x60] sm:$0xff]   ;;  %v3630_v16 = vld [vmem:[%s4822_s1 + $0x58] sm:$0xff]   ;;  %v3634_v20 = vld [vmem:[%s4822_s1 + $0x50] sm:$0xff]   ;;  %vm362_vm0 = vcmp.lt.s32.totalorder %v4013_v29, 1  ;;  %vm387_vm1 = vcmp.lt.s32.totalorder %v4013_v29, 7  ;;  %vm970_vm2 = vcmp.lt.s32.totalorder %v4013_v29, 2 }
  0x10   : > { %3324 = vmatprep.subr.bf16.mxu1 %v3620_v6  ;;  %v3627_v13 = vld [vmem:[%s4822_s1 + $0x20] sm:$0xff]   ;;  %v3631_v17 = vld [vmem:[%s4822_s1 + $0x18] sm:$0xff]   ;;  %v3635_v21 = vld [vmem:[%s4822_s1 + $0x10] sm:$0xff]   ;;  %vm983_vm3 = vcmp.lt.s32.totalorder %v4013_v29, 6  ;;  %vm1311_vm4 = vcmp.lt.s32.totalorder %v4013_v29, 4 }
  0x11   : > { %3297 = vmatpush3.bf16.msra.mxu0 %v3619_v5  ;;  %v3628_v14 = vld [vmem:[%s4822_s1 + $0xe0] sm:$0xff]   ;;  %v3632_v18 = vld [vmem:[%s4822_s1 + $0xd8] sm:$0xff]   ;;  %v3636_v22 = vld [vmem:[%s4822_s1 + $0xd0] sm:$0xff]  }
  0x12   : > { %3298 = vmatprep.subr.bf16.mxu0 %v3622_v8  ;;  %v3629_v15 = vld [vmem:[%s4822_s1 + $0xa0] sm:$0xff]   ;;  %v3633_v19 = vld [vmem:[%s4822_s1 + $0x98] sm:$0xff]   ;;  %v3637_v23 = vld [vmem:[%s4822_s1 + $0x90] sm:$0xff]  }
  0x13   : > { %3325 = vmatpush3.bf16.msra.mxu1 %v3621_v7  ;;  %v3638_v25 = vld [vmem:[%s4822_s1 + $0x48] sm:$0xff]   ;;  %v3642_v30 = vld [vmem:[%s4822_s1 + $0x40] sm:$0xff]   ;;  %v349_v34 = vld [vmem:[%s4021_s22 + $0x18] sm:$0xff] }
  0x14   : > { %3326 = vmatprep.subr.bf16.mxu1 %v3624_v10  ;;  %v3639_v26 = vld [vmem:[%s4822_s1 + $0x8] sm:$0xff]   ;;  %v3643_v31 = vld [vmem:[%s4822_s1] sm:$0xff]   ;;  %v4034_v35 = vld [vmem:[%s4021_s22 + $0x38] sm:$0xff]  ;;  %v357_v37 = vrot.slane %v349_v34, 7  ;;  %v382_v59 = vrot.slane %v349_v34, 1 }
  0x15   : > { %3299 = vmatpush3.bf16.msra.mxu0 %v3623_v9  ;;  %v3640_v27 = vld [vmem:[%s4822_s1 + $0xc8] sm:$0xff]   ;;  %v3644_v32 = vld [vmem:[%s4822_s1 + $0xc0] sm:$0xff]   ;;  %v361_v38 = vrot.slane %v4034_v35, 7  ;;  %v4047_v42 = vld [vmem:[%s4021_s22 + $0x10] sm:$0xff] }
  0x16   : > { %3300 = vmatprep.subr.bf16.mxu0 %v3626_v12  ;;  %v3641_v28 = vld [vmem:[%s4822_s1 + $0x88] sm:$0xff]   ;;  %v3645_v39 = vld [vmem:[%s4822_s1 + $0x80] sm:$0xff]   ;;  %v4054_v45 = vld [vmem:[%s4021_s22 + $0x30] sm:$0xff]  ;;  %v356_v47 = vrot.slane %v4047_v42, 7 }
  0x17   : > { %3327 = vmatpush3.bf16.msra.mxu1 %v3625_v11  ;;  %v4030_v33 = vld [vmem:[%s4021_s22 + $0x8] sm:$0xff]  ;;  %v4044_v41 = vld [vmem:[%s4021_s22] sm:$0xff]  ;;  %v3646_v48 = vld [vmem:[%s4822_s1 + $0x178] sm:$0xff]   ;;  %v360_v50 = vrot.slane %v4054_v45, 7 }
  0x18   : > { %3328 = vmatprep.subr.bf16.mxu1 %v3628_v14  ;;  %v355_v36 = vrot.slane %v4030_v33, 7  ;;  %v376_v40 = vpack.c.bf16 %v349_v34, %v4030_v33  ;;  %v354_v46 = vrot.slane %v4044_v41, 7  ;;  %v375_v52 = vpack.c.bf16 %v4047_v42, %v4044_v41  ;;  %v3647_v54 = vld [vmem:[%s4822_s1 + $0x138] sm:$0xff]   ;;  %v3648_v56 = vld [vmem:[%s4822_s1 + $0x170] sm:$0xff]   ;;  %v3650_v60 = vld [vmem:[%s4822_s1 + $0x168] sm:$0xff]  }
  0x19   : > { %3301 = vmatpush3.bf16.msra.mxu0 %v3627_v13  ;;  %v380_v57 = vrot.slane %v4030_v33, 1  ;;  %v3649_v58 = vld [vmem:[%s4822_s1 + $0x130] sm:$0xff]   ;;  %v351_v61 = vld [vmem:[%s4021_s22 + $0x28] sm:$0xff]  ;;  %v350_v1 = vld [vmem:[%s4021_s22 + $0x20] sm:$0xff]  ;;  %v379_v11 = vrot.slane %v4044_v41, 1 }
  0x1a   : > { %3302 = vmatprep.subr.bf16.mxu0 %v3630_v16  ;;  %v368_v43 = vsel %vm362_vm0, %v355_v36, %v357_v37  ;;  %v370_v44 = vsel %vm362_vm0, %v361_v38, %v355_v36  ;;  %872 = vmatprep.mubr.bf16.mxu1 %v376_v40  ;;  %v367_v51 = vsel %vm362_vm0, %v354_v46, %v356_v47  ;;  %v3651_v62 = vld [vmem:[%s4822_s1 + $0x128] sm:$0xff]   ;;  %v359_v63 = vrot.slane %v351_v61, 7  ;;  %v3652_v4 = vld [vmem:[%s4822_s1 + $0x160] sm:$0xff]   ;;  %v3663_v40 = vld [vmem:[%s4824_s3 + $0x38] sm:$0xff]  }
  0x1b   : > { %3329 = vmatpush3.bf16.msra.mxu1 %v3629_v15  ;;  %v372_v49 = vpack.c.bf16 %v368_v43, %v370_v44  ;;  %v369_v53 = vsel %vm362_vm0, %v360_v50, %v354_v46  ;;  %v378_v0 = vpack.c.bf16 %v4034_v35, %v351_v61  ;;  %v384_v2 = vrot.slane %v351_v61, 1  ;;  %v3653_v16 = vld [vmem:[%s4822_s1 + $0x120] sm:$0xff]   ;;  %v3658_v24 = vld [vmem:[%s4822_s1 + $0x148] sm:$0xff]   ;;  %v3664_v41 = vld [vmem:[%s4824_s3 + $0xb8] sm:$0xff]  }
  0x1c   : > { %3330 = vmatprep.subr.bf16.mxu1 %v3632_v18  ;;  %v371_v55 = vpack.c.bf16 %v367_v51, %v369_v53  ;;  %v393_v3 = vsel %vm387_vm1, %v380_v57, %v382_v59  ;;  %v364_v5 = vsel %vm362_vm0, %v359_v63, %v361_v38  ;;  %v366_v6 = vsel %vm362_vm0, %v357_v37, %v359_v63  ;;  %v3654_v18 = vld [vmem:[%s4822_s1 + $0x158] sm:$0xff]   ;;  %v3666_v43 = vld [vmem:[%s4824_s3 + $0x30] sm:$0xff]   ;;  %v3669_v46 = vld [vmem:[%s4824_s3 + $0x28] sm:$0xff]  }
  0x1d   : > { %3303 = vmatpush3.bf16.msra.mxu0 %v3631_v17  ;;  %823 = vmatprep.mubr.bf16.mxu0 %v372_v49  ;;  %v358_v7 = vrot.slane %v350_v1, 7  ;;  %v374_v8 = vpack.c.bf16 %v364_v5, %v366_v6  ;;  %v377_v9 = vpack.c.bf16 %v4054_v45, %v350_v1  ;;  %v391_v10 = vsel %vm387_vm1, %v382_v59, %v384_v2  ;;  %v3667_v44 = vld [vmem:[%s4824_s3 + $0xb0] sm:$0xff]   ;;  %v3672_v49 = vld [vmem:[%s4824_s3 + $0x20] sm:$0xff]   ;;  %v3674_v51 = vld [vmem:[%s4824_s3 + $0x58] sm:$0xff]  }
  0x1e   : > { %3304 = vmatprep.subr.bf16.mxu0 %v3634_v20  ;;  %v397_v14 = vpack.c.bf16 %v391_v10, %v393_v3  ;;  %v381_v15 = vrot.slane %v4047_v42, 1  ;;  %v3655_v20 = vld [vmem:[%s4822_s1 + $0x118] sm:$0xff]   ;;  %v3665_v42 = vld [vmem:[%s4824_s3 + $0x70] sm:$0xff]   ;;  %v3682_v59 = vld [vmem:[%s4824_s3 + $0x88] sm:$0xff]  }
  0x1f   : > { %3331 = vmatpush3.bf16.msra.mxu1 %v3633_v19  ;;  %v363_v12 = vsel %vm362_vm0, %v358_v7, %v360_v50  ;;  %v365_v13 = vsel %vm362_vm0, %v356_v47, %v358_v7  ;;  %v386_v19 = vrot.slane %v4034_v35, 1  ;;  %v385_v35 = vrot.slane %v4054_v45, 1  ;;  %v3668_v45 = vld [vmem:[%s4824_s3 + $0x68] sm:$0xff]   ;;  %v3673_v50 = vld [vmem:[%s4824_s3 + $0xa0] sm:$0xff]   ;;  %v3676_v53 = vld [vmem:[%s4824_s3 + $0x98] sm:$0xff]  }
  0x20   : > { %3332 = vmatprep.subr.bf16.mxu1 %v3636_v22  ;;  %v373_v17 = vpack.c.bf16 %v363_v12, %v365_v13  ;;  %v3656_v22 = vld [vmem:[%s4822_s1 + $0x150] sm:$0xff]   ;;  %v3670_v47 = vld [vmem:[%s4824_s3 + $0xa8] sm:$0xff]   ;;  %v3684_v61 = vld [vmem:[%s4824_s3] sm:$0xff]  }
  0x21   : > { %3305 = vmatpush3.bf16.msra.mxu0 %v3635_v21  ;;  %v383_v21 = vrot.slane %v350_v1, 1  ;;  %v394_v37 = vsel %vm387_vm1, %v385_v35, %v379_v11  ;;  %v3688_v63 = vld [vmem:[%s4826_s5 + $0x74] ss:$8 sps:$4 sm:$0xff]  }
  0x22   : > { %3306 = vmatprep.subr.bf16.mxu0 %v3638_v25  ;;  %v3659_v25 = vld [vmem:[%s4822_s1 + $0x108] sm:$0xff]  }
  0x23   : > { %3333 = vmatpush3.bf16.msra.mxu1 %v3637_v23  ;;  %v3657_v23 = vld [vmem:[%s4822_s1 + $0x110] sm:$0xff]   ;;  %v388_v36 = vsel %vm387_vm1, %v383_v21, %v385_v35 }
  0x24   : > { %3334 = vmatprep.subr.bf16.mxu1 %v3640_v27  ;;  %v3661_v27 = vld [vmem:[%s4822_s1 + $0x100] sm:$0xff]   ;;  %v398_v38 = vpack.c.bf16 %v394_v37, %v388_v36 }
  0x25   : > { %3307 = vmatpush3.bf16.msra.mxu0 %v3639_v26  ;;  %v3660_v26 = vld [vmem:[%s4822_s1 + $0x140] sm:$0xff]  }
  0x26   : > { %3308 = vmatprep.subr.bf16.mxu0 %v3642_v30  ;;  %v392_v30 = vsel %vm387_vm1, %v379_v11, %v381_v15 }
  0x27   : > { %3335 = vmatpush3.bf16.msra.mxu1 %v3641_v28  ;;  %v390_v28 = vsel %vm387_vm1, %v381_v15, %v383_v21 }
  0x28   : > { %3336 = vmatprep.subr.bf16.mxu1 %v3644_v32  ;;  %v395_v32 = vsel %vm387_vm1, %v386_v19, %v380_v57  ;;  %v396_v33 = vpack.c.bf16 %v390_v28, %v392_v30  ;;  %v3680_v57 = vld [vmem:[%s4824_s3 + $0x48] sm:$0xff]  }
  0x29   : > { %3309 = vmatpush3.bf16.msra.mxu0 %v3643_v31  ;;  %v389_v31 = vsel %vm387_vm1, %v384_v2, %v386_v19 }
  0x2a   : > { %3350 = vmatprep.subr.bf16.mxu0 %v3646_v48  ;;  %v399_v34 = vpack.c.bf16 %v395_v32, %v389_v31  ;;  %v3671_v48 = vld [vmem:[%s4824_s3 + $0x60] sm:$0xff]  }
  0x2b   : > { %3337 = vmatpush3.bf16.msra.mxu1 %v3645_v39  ;;  %v3662_v39 = vld [vmem:[%s4824_s3 + $0x78] sm:$0xff]  }
  0x2c   : > { %824 = vmatmul.mubr.bf16.vlgmr.msra.gmra.mxu0 %v371_v55  ;;  %3378 = vmatprep.subr.bf16.mxu1 %v3662_v39  ;;  %v3678_v55 = vld [vmem:[%s4824_s3 + $0x10] sm:$0xff]  }
  0x2d   : > { %3351 = vmatpush3.bf16.msra.mxu0 %v3647_v54  ;;  %831 = vmatprep.mubr.bf16.mxu0 %v374_v8  ;;  %v3677_v54 = vld [vmem:[%s4824_s3 + $0x50] sm:$0xff]  }
  0x2e   : > { %873 = vmatmul.mubr.bf16.vlgmr.msra.gmra.mxu1 %v375_v52  ;;  %3352 = vmatprep.subr.bf16.mxu0 %v3648_v56  ;;  %v3675_v52 = vld [vmem:[%s4824_s3 + $0x18] sm:$0xff]   ;;  %v3679_v56 = vld [vmem:[%s4824_s3 + $0x90] sm:$0xff]  }
  0x2f   : > { %880 = vmatprep.mubr.bf16.mxu1 %v378_v0  ;;  %3379 = vmatpush3.bf16.msra.mxu1 %v3663_v40  ;;  %v3715_v0 = vld [vmem:[%s4826_s5 + $0x174] ss:$8 sps:$4 sm:$0xff]  }
  0x30   : > { %3380 = vmatprep.subr.bf16.mxu1 %v3665_v42 }
  0x31   : > { %3353 = vmatpush3.bf16.msra.mxu0 %v3649_v58  ;;  %v3681_v58 = vld [vmem:[%s4824_s3 + $0x8] sm:$0xff]  }
  0x32   : > { %3354 = vmatprep.subr.bf16.mxu0 %v3650_v60  ;;  %v3683_v60 = vld [vmem:[%s4824_s3 + $0x40] sm:$0xff]  }
  0x33   : > { %3381 = vmatpush3.bf16.msra.mxu1 %v3666_v43 }
  0x34   : > { %832 = vmatmul.mubr.bf16.gmra.mxu0 %v373_v17  ;;  %3382 = vmatprep.subr.bf16.mxu1 %v3668_v45 }
  0x35   : > { %3355 = vmatpush3.bf16.msra.mxu0 %v3651_v62  ;;  %921 = vmatprep.mubr.bf16.mxu0 %v397_v14  ;;  %v3685_v62 = vld [vmem:[%s4824_s3 + $0x80] sm:$0xff]  }
  0x36   : > { %3356 = vmatprep.subr.bf16.mxu0 %v3652_v4  ;;  %881 = vmatmul.mubr.bf16.gmra.mxu1 %v377_v9 }
  0x37   : > { %3383 = vmatpush3.bf16.msra.mxu1 %v3669_v46 }
  0x38   : > { %3384 = vmatprep.subr.bf16.mxu1 %v3671_v48 }
  0x39   : > { %3357 = vmatpush3.bf16.msra.mxu0 %v3653_v16 }
  0x3a   : > { %3358 = vmatprep.subr.bf16.mxu0 %v3654_v18  ;;  %v2912_v18 = vld [vmem:[%s4823_s2] ss:$0 sm:$0xff] }
  0x3b   : > { %3385 = vmatpush3.bf16.msra.mxu1 %v3672_v49 }
  0x3c   : > { %3386 = vmatprep.subr.bf16.mxu1 %v3674_v51 }
  0x3d   : > { %3359 = vmatpush3.bf16.msra.mxu0 %v3655_v20 }
  0x3e   : > { %3360 = vmatprep.subr.bf16.mxu0 %v3656_v22 }
  0x3f   : > { %3387 = vmatpush3.bf16.msra.mxu1 %v3675_v52 }
  0x40   : > { %3388 = vmatprep.subr.bf16.mxu1 %v3677_v54 }
  0x41   : > { %3361 = vmatpush3.bf16.msra.mxu0 %v3657_v23 }
  0x42   : > { %3362 = vmatprep.subr.bf16.mxu0 %v3658_v24 }
  0x43   : > { %3389 = vmatpush3.bf16.msra.mxu1 %v3678_v55 }
  0x44   : > { %3390 = vmatprep.subr.bf16.mxu1 %v3680_v57 }
  0x45   : > { %3363 = vmatpush3.bf16.msra.mxu0 %v3659_v25 }
  0x46   : > { %3364 = vmatprep.subr.bf16.mxu0 %v3660_v26 }
  0x47   : > { %3391 = vmatpush3.bf16.msra.mxu1 %v3681_v58 }
  0x48   : > { %3392 = vmatprep.subr.bf16.mxu1 %v3683_v60 }
  0x49   : > { %3365 = vmatpush3.bf16.msra.mxu0 %v3661_v27 }
  0x4a   : > { %3584 = vmatprep.subr.bf16.mxu0 %v3664_v41 }
  0x4b   : > { %3393 = vmatpush3.bf16.msra.mxu1 %v3684_v61 }
  0x4c   : > { %922 = vmatmul.mubr.bf16.vlgmr.msra.gmra.mxu0 %v396_v33  ;;  %1622 = vmatprep.subr.bf16.mxu1 %v3688_v63 }
  0x4d   : > { %929 = vmatprep.mubr.bf16.mxu0 %v399_v34  ;;  %3585 = vmatpush3.bf16.msra.mxu0 %v3664_v41  ;;  %v3866_v41 = vmov 0.0  }
  0x4e   : > { %3586 = vmatprep.subr.bf16.mxu0 %v3667_v44  ;;  %v957_v42 = vrot.slane %v3866_v41, 1 }
  0x51   : > { %3587 = vmatpush3.bf16.msra.mxu0 %v3667_v44 }
  0x52   : > { %3588 = vmatprep.subr.bf16.mxu0 %v3670_v47 }
  0x54   : > { %930 = vmatmul.mubr.bf16.gmra.mxu0 %v398_v38 }
  0x55   : > { %3589 = vmatpush3.bf16.msra.mxu0 %v3670_v47 }
  0x56   : > { %3590 = vmatprep.subr.bf16.mxu0 %v3673_v50 }
  0x59   : > { %3591 = vmatpush3.bf16.msra.mxu0 %v3673_v50 }
  0x5a   : > { %3592 = vmatprep.subr.bf16.mxu0 %v3676_v53 }
  0x5d   : > { %3593 = vmatpush3.bf16.msra.mxu0 %v3676_v53 }
  0x5e   : > { %3594 = vmatprep.subr.bf16.mxu0 %v3679_v56 }
  0x61   : > { %3595 = vmatpush3.bf16.msra.mxu0 %v3679_v56 }
  0x62   : > { %3596 = vmatprep.subr.bf16.mxu0 %v3682_v59 }
  0x65   : > { %3597 = vmatpush3.bf16.msra.mxu0 %v3682_v59 }
  0x66   : > { %3598 = vmatprep.subr.bf16.mxu0 %v3685_v62 }
  0x69   : > { %3599 = vmatpush3.bf16.msra.mxu0 %v3685_v62 }
  0x6a   : > { %1675 = vmatprep.subr.bf16.mxu0 %v3715_v0 }
  0xec   : > { %v3310_v2 = vpop.f32.mrf.mxu0 }
  0xee   : > { %v3338_v1 = vpop.f32.mrf.mxu1  ;;  %v3311_v4 = vpop.f32.mrf.mxu0 }
  0xef   : > { %v3312_v17 = vadd.f32 %v3311_v4, %v3310_v2 }
  0xf0   : > { %v3339_v3 = vpop.f32.mrf.mxu1  ;;  %v3313_v6 = vpop.f32.mrf.mxu0 }
  0xf1   : > { %v826_v20 = vadd.f32 %v3312_v17, %v2912_v18  ;;  %v3340_v21 = vadd.f32 %v3339_v3, %v3338_v1 }
  0xf2   : > { %v3341_v5 = vpop.f32.mrf.mxu1  ;;  %v3314_v8 = vpop.f32.mrf.mxu0 }
  0xf3   : > { %v3315_v19 = vadd.f32 %v3314_v8, %v3313_v6  ;;  %v875_v26 = vadd.f32 %v3340_v21, %v826_v20 }
  0xf4   : > { %v3342_v7 = vpop.f32.mrf.mxu1  ;;  %v3316_v10 = vpop.f32.mrf.mxu0 }
  0xf5   : > { %v829_v23 = vadd.f32 %v3315_v19, %v2912_v18  ;;  %v3343_v24 = vadd.f32 %v3342_v7, %v3341_v5  ;;  %v3689_v19 = vld [vmem:[%s4826_s5 + $0x60] ss:$8 sps:$4 sm:$0xff]  }
  0xf6   : > { %v3344_v9 = vpop.f32.mrf.mxu1  ;;  %v3317_v12 = vpop.f32.mrf.mxu0 }
  0xf7   : > { %v3318_v27 = vadd.f32 %v3317_v12, %v3316_v10  ;;  %v878_v32 = vadd.f32 %v3343_v24, %v829_v23  ;;  %v3692_v24 = vld [vmem:[%s4826_s5 + $0x50] ss:$8 sps:$4 sm:$0xff]  }
  0xf8   : > { %v3345_v11 = vpop.f32.mrf.mxu1  ;;  %v3319_v14 = vpop.f32.mrf.mxu0 }
  0xf9   : > { %v834_v34 = vadd.f32 %v3318_v27, %v2912_v18  ;;  %v3346_v35 = vadd.f32 %v3345_v11, %v3344_v9  ;;  %v3686_v14 = vld [vmem:[%s4826_s5 + $0x70] ss:$8 sps:$4 sm:$0xff]   ;;  %v3691_v18 = vld [vmem:[%s4826_s5 + $0x64] ss:$8 sps:$4 sm:$0xff]   ;;  %v3700_v27 = vld [vmem:[%s4826_s5 + $0x34] ss:$8 sps:$4 sm:$0xff]  }
  0xfa   : > { %v3347_v13 = vpop.f32.mrf.mxu1  ;;  %v3320_v16 = vpop.f32.mrf.mxu0 }
  0xfb   : > { %v883_v44 = vadd.f32 %v3346_v35, %v834_v34  ;;  %v3709_v34 = vld [vmem:[%s4826_s5 + $0x4] ss:$8 sps:$4 sm:$0xff]   ;;  %v3707_v35 = vld [vmem:[%s4826_s5] ss:$8 sps:$4 sm:$0xff]  }
  0xfc   : > { %v3348_v15 = vpop.f32.mrf.mxu1 }
  0xfd   : > { %v3713_v15 = vld [vmem:[%s4826_s5 + $0x170] ss:$8 sps:$4 sm:$0xff]  }
 0x10c   : > { %v3366_v22 = vpop.f32.mrf.mxu0 }
 0x10e   : > { %v3367_v25 = vpop.f32.mrf.mxu0 }
 0x10f   : > { %v3368_v28 = vadd.f32 %v3367_v25, %v3366_v22  ;;  %v3694_v22 = vld [vmem:[%s4826_s5 + $0x54] ss:$8 sps:$4 sm:$0xff]   ;;  %v3697_v25 = vld [vmem:[%s4826_s5 + $0x44] ss:$8 sps:$4 sm:$0xff]  }
 0x110   : > { %v3369_v30 = vpop.f32.mrf.mxu0 }
 0x111   : > { %v924_v31 = vadd.f32 %v3368_v28, %v875_v26  ;;  %v3695_v26 = vld [vmem:[%s4826_s5 + $0x40] ss:$8 sps:$4 sm:$0xff]   ;;  %v3698_v28 = vld [vmem:[%s4826_s5 + $0x30] ss:$8 sps:$4 sm:$0xff]  }
 0x112   : > { %v3370_v33 = vpop.f32.mrf.mxu0 }
 0x113   : > { %v938_v36 = vmax.f32 %v924_v31, 0.0  ;;  %v3371_v37 = vadd.f32 %v3370_v33, %v3369_v30  ;;  %v3703_v30 = vld [vmem:[%s4826_s5 + $0x24] ss:$8 sps:$4 sm:$0xff]   ;;  %v3701_v31 = vld [vmem:[%s4826_s5 + $0x20] ss:$8 sps:$4 sm:$0xff]  }
 0x114   : > { %v3372_v38 = vpop.f32.mrf.mxu0  ;;  %v3704_v33 = vld [vmem:[%s4826_s5 + $0x10] ss:$8 sps:$4 sm:$0xff]  }
 0x115   : > { %v927_v39 = vadd.f32 %v3371_v37, %v878_v32  ;;  %v954_v40 = vrot.slane %v938_v36, 1  ;;  %v3706_v32 = vld [vmem:[%s4826_s5 + $0x14] ss:$8 sps:$4 sm:$0xff]   ;;  %v3710_v37 = vld [vmem:[%s4826_s5 + $0xf0] ss:$8 sps:$4 sm:$0xff]  }
 0x116   : > { %v3373_v43 = vpop.f32.mrf.mxu0 }
 0x117   : > { %v939_v45 = vmax.f32 %v927_v39, 0.0  ;;  %v3374_v46 = vadd.f32 %v3373_v43, %v3372_v38  ;;  %v961_v50 = vsel %vm387_vm1, %v957_v42, %v954_v40  ;;  %v3716_v38 = vld [vmem:[%s4826_s5 + $0xe0] ss:$8 sps:$4 sm:$0xff]   ;;  %v3718_v39 = vld [vmem:[%s4826_s5 + $0xe4] ss:$8 sps:$4 sm:$0xff]  }
 0x118   : > { %v3375_v47 = vpop.f32.mrf.mxu0  ;;  %v965_v55 = vmax.f32 %v961_v50, 0.0  ;;  %v3724_v43 = vld [vmem:[%s4826_s5 + $0xd4] ss:$8 sps:$4 sm:$0xff]   ;;  %v3731_v50 = vld [vmem:[%s4826_s5 + $0x140] ss:$8 sps:$4 sm:$0xff]  }
 0x119   : > { %v955_v48 = vrot.slane %v939_v45, 1  ;;  %v932_v49 = vadd.f32 %v3374_v46, %v883_v44  ;;  %v3727_v44 = vld [vmem:[%s4826_s5 + $0x154] ss:$8 sps:$4 sm:$0xff]   ;;  %v3725_v46 = vld [vmem:[%s4826_s5 + $0x150] ss:$8 sps:$4 sm:$0xff]  }
 0x11a   : > { %v3376_v51 = vpop.f32.mrf.mxu0  ;;  %v969_v63 = vrot.slane %v965_v55, 6  ;;  %v982_v0 = vrot.slane %v965_v55, 2  ;;  %v3730_v47 = vld [vmem:[%s4826_s5 + $0xc4] ss:$8 sps:$4 sm:$0xff]  }
 0x11b   : > { %v940_v52 = vmax.f32 %v932_v49, 0.0  ;;  %v960_v53 = vsel %vm387_vm1, %v954_v40, %v955_v48  ;;  %v3719_v40 = vld [vmem:[%s4826_s5 + $0x160] ss:$8 sps:$4 sm:$0xff]   ;;  %v3736_v51 = vld [vmem:[%s4826_s5 + $0xb4] ss:$8 sps:$4 sm:$0xff]  }
 0x11c   : > { %v962_v54 = vmax.f32 %v938_v36, %v960_v53  ;;  %v3712_v36 = vld [vmem:[%s4826_s5 + $0xf4] ss:$8 sps:$4 sm:$0xff]   ;;  %v3728_v49 = vld [vmem:[%s4826_s5 + $0xc0] ss:$8 sps:$4 sm:$0xff]   ;;  %v3734_v53 = vld [vmem:[%s4826_s5 + $0xb0] ss:$8 sps:$4 sm:$0xff]  }
 0x11d   : > { %v956_v56 = vrot.slane %v940_v52, 1 }
 0x11e   : > { %v966_v59 = vrot.slane %v962_v54, 6  ;;  %v979_v60 = vrot.slane %v962_v54, 2 }
 0x11f   : > { %v958_v57 = vsel %vm387_vm1, %v956_v56, %v957_v42  ;;  %v959_v58 = vsel %vm387_vm1, %v955_v48, %v956_v56  ;;  %v3721_v42 = vld [vmem:[%s4826_s5 + $0x164] ss:$8 sps:$4 sm:$0xff]  }
 0x120   : > { %v964_v61 = vmax.f32 %v940_v52, %v958_v57  ;;  %v963_v62 = vmax.f32 %v939_v45, %v959_v58  ;;  %v974_v5 = vsel %vm970_vm2, %v969_v63, %v966_v59  ;;  %v987_v6 = vsel %vm983_vm3, %v982_v0, %v979_v60  ;;  %v3722_v45 = vld [vmem:[%s4826_s5 + $0xd0] ss:$8 sps:$4 sm:$0xff]   ;;  %v3733_v48 = vld [vmem:[%s4826_s5 + $0x144] ss:$8 sps:$4 sm:$0xff]   ;;  %v3739_v52 = vld [vmem:[%s4826_s5 + $0x134] ss:$8 sps:$4 sm:$0xff]  }
 0x121   : > { %v3745_v56 = vld [vmem:[%s4826_s5 + $0x124] ss:$8 sps:$4 sm:$0xff]   ;;  %v3740_v57 = vld [vmem:[%s4826_s5 + $0xa0] ss:$8 sps:$4 sm:$0xff]  }
 0x122   : > { %v967_v1 = vrot.slane %v963_v62, 6  ;;  %v977_v2 = vpack.c.bf16 %v963_v62, %v962_v54  ;;  %v980_v3 = vrot.slane %v963_v62, 2  ;;  %v981_v4 = vrot.slane %v964_v61, 2  ;;  %v3737_v54 = vld [vmem:[%s4826_s5 + $0x130] ss:$8 sps:$4 sm:$0xff]  }
 0x123   : > { %v978_v16 = vpack.c.bf16 %v965_v55, %v964_v61  ;;  %v968_v17 = vrot.slane %v964_v61, 6  ;;  %v3742_v55 = vld [vmem:[%s4826_s5 + $0xa4] ss:$8 sps:$4 sm:$0xff]   ;;  %v3743_v58 = vld [vmem:[%s4826_s5 + $0x120] ss:$8 sps:$4 sm:$0xff]  }
 0x124   : > { %1221 = vmatprep.mubr.bf16.mxu1 %v977_v2  ;;  %v973_v7 = vsel %vm970_vm2, %v966_v59, %v967_v1  ;;  %v985_v8 = vsel %vm983_vm3, %v980_v3, %v981_v4  ;;  %v986_v9 = vsel %vm983_vm3, %v979_v60, %v980_v3  ;;  %v984_v10 = vsel %vm983_vm3, %v981_v4, %v982_v0  ;;  %v3748_v59 = vld [vmem:[%s4826_s5 + $0x94] ss:$8 sps:$4 sm:$0xff]   ;;  %v3746_v61 = vld [vmem:[%s4826_s5 + $0x90] ss:$8 sps:$4 sm:$0xff]   ;;  %v3754_v0 = vld [vmem:[%s4826_s5 + $0x84] ss:$8 sps:$4 sm:$0xff]  }
 0x125   : > { %v975_v11 = vpack.c.bf16 %v973_v7, %v974_v5  ;;  %v988_v12 = vpack.c.bf16 %v985_v8, %v986_v9  ;;  %v989_v13 = vpack.c.bf16 %v987_v6, %v984_v10  ;;  %v971_v20 = vsel %vm970_vm2, %v968_v17, %v969_v63  ;;  %v3751_v60 = vld [vmem:[%s4826_s5 + $0x114] ss:$8 sps:$4 sm:$0xff]   ;;  %v3749_v62 = vld [vmem:[%s4826_s5 + $0x110] ss:$8 sps:$4 sm:$0xff]   ;;  %v3752_v63 = vld [vmem:[%s4826_s5 + $0x80] ss:$8 sps:$4 sm:$0xff]  }
 0x126   : > { %v972_v21 = vsel %vm970_vm2, %v967_v1, %v968_v17  ;;  %v3755_v1 = vld [vmem:[%s4826_s5 + $0x100] ss:$8 sps:$4 sm:$0xff]   ;;  %v3757_v2 = vld [vmem:[%s4826_s5 + $0x104] ss:$8 sps:$4 sm:$0xff]   ;;  %v3867_v3 = vmov 0   ;;  %v3758_v4 = vld [vmem:[%s4828_s7 + $0x78] sm:$0xff]  }
 0x127   : > { %1222 = vmatmul.mubr.bf16.vlgmr.msra.gmra.mxu1 %v975_v11  ;;  %3600 = vmatprep.mubr.bf16.mxu0 %v988_v12  ;;  %v976_v23 = vpack.c.bf16 %v971_v20, %v972_v21  ;;  %v3762_v5 = vld [vmem:[%s4828_s7 + $0xf8] sm:$0xff]   ;;  %v2961_v9 = vld [vmem:[%s4825_s4] ss:$0 sm:$0xff] }
 0x128   : > { %1229 = vmatprep.mubr.bf16.mxu1 %v978_v16  ;;  %3601 = vmatmul.mubr.bf16.vlgmr.msra.gmra.mxu0 %v989_v13 }
 0x129   : > { %1623 = vmatpush1.bf16.msra.mxu1 %v3686_v14  ;;  %1676 = vmatpush1.bf16.msra.mxu0 %v3713_v15 }
 0x12a   : > { %1624 = vmatprep.subr.bf16.mxu1 %v3691_v18  ;;  %1677 = vmatprep.subr.bf16.mxu0 %v3721_v42 }
 0x12b   : > { %1707 = vmatprep.mubr.bf16.mxu0 %v3867_v3 }
 0x12d   : > { %1625 = vmatpush1.bf16.msra.mxu1 %v3689_v19  ;;  %1678 = vmatpush1.bf16.msra.mxu0 %v3719_v40 }
 0x12e   : > { %1626 = vmatprep.subr.bf16.mxu1 %v3694_v22  ;;  %1679 = vmatprep.subr.bf16.mxu0 %v3727_v44 }
 0x12f   : > { %1230 = vmatmul.mubr.bf16.gmra.mxu1 %v976_v23 }
 0x131   : > { %1627 = vmatpush1.bf16.msra.mxu1 %v3692_v24  ;;  %1680 = vmatpush1.bf16.msra.mxu0 %v3725_v46 }
 0x132   : > { %1628 = vmatprep.subr.bf16.mxu1 %v3697_v25  ;;  %1681 = vmatprep.subr.bf16.mxu0 %v3733_v48 }
 0x135   : > { %1629 = vmatpush1.bf16.msra.mxu1 %v3695_v26  ;;  %1682 = vmatpush1.bf16.msra.mxu0 %v3731_v50 }
 0x136   : > { %1630 = vmatprep.subr.bf16.mxu1 %v3700_v27  ;;  %1683 = vmatprep.subr.bf16.mxu0 %v3739_v52  ;;  %v1298_v27 = vrot.slane %v3866_v41, 2 }
 0x139   : > { %1631 = vmatpush1.bf16.msra.mxu1 %v3698_v28  ;;  %1684 = vmatpush1.bf16.msra.mxu0 %v3737_v54 }
 0x13a   : > { %1632 = vmatprep.subr.bf16.mxu1 %v3703_v30  ;;  %1685 = vmatprep.subr.bf16.mxu0 %v3745_v56  ;;  %v3763_v56 = vld [vmem:[%s4828_s7 + $0xb8] sm:$0xff]  }
 0x13d   : > { %1633 = vmatpush1.bf16.msra.mxu1 %v3701_v31  ;;  %1686 = vmatpush1.bf16.msra.mxu0 %v3743_v58  ;;  %v3760_v58 = vld [vmem:[%s4828_s7 + $0x70] sm:$0xff]  }
 0x13e   : > { %1634 = vmatprep.subr.bf16.mxu1 %v3706_v32  ;;  %1687 = vmatprep.subr.bf16.mxu0 %v3751_v60  ;;  %v3761_v60 = vld [vmem:[%s4828_s7 + $0x30] sm:$0xff]  }
 0x141   : > { %1635 = vmatpush1.bf16.msra.mxu1 %v3704_v33  ;;  %1688 = vmatpush1.bf16.msra.mxu0 %v3749_v62 }
 0x142   : > { %1636 = vmatprep.subr.bf16.mxu1 %v3709_v34  ;;  %1689 = vmatprep.subr.bf16.mxu0 %v3757_v2 }
 0x145   : > { %1637 = vmatpush1.bf16.msra.mxu1 %v3707_v35  ;;  %1690 = vmatpush1.bf16.msra.mxu0 %v3755_v1 }
 0x146   : > { %1638 = vmatprep.subr.bf16.mxu1 %v3712_v36  ;;  %3416 = vmatprep.subr.bf16.mxu0 %v3762_v5  ;;  %v3768_v5 = vld [vmem:[%s4828_s7 + $0x60] sm:$0xff]  }
 0x149   : > { %1639 = vmatpush2.bf16.msra.mxu1 %v3710_v37 }
 0x14a   : > { %1640 = vmatprep.subr.bf16.mxu1 %v3718_v39 }
 0x14d   : > { %1641 = vmatpush2.bf16.msra.mxu1 %v3716_v38 }
 0x14e   : > { %1642 = vmatprep.subr.bf16.mxu1 %v3724_v43 }
 0x151   : > { %1643 = vmatpush2.bf16.msra.mxu1 %v3722_v45 }
 0x152   : > { %1644 = vmatprep.subr.bf16.mxu1 %v3730_v47 }
 0x155   : > { %1645 = vmatpush2.bf16.msra.mxu1 %v3728_v49 }
 0x156   : > { %1646 = vmatprep.subr.bf16.mxu1 %v3736_v51 }
 0x159   : > { %1647 = vmatpush2.bf16.msra.mxu1 %v3734_v53 }
 0x15a   : > { %1648 = vmatprep.subr.bf16.mxu1 %v3742_v55  ;;  %v3759_v55 = vld [vmem:[%s4828_s7 + $0x38] sm:$0xff]  }
 0x15d   : > { %1649 = vmatpush2.bf16.msra.mxu1 %v3740_v57 }
 0x15e   : > { %1650 = vmatprep.subr.bf16.mxu1 %v3748_v59  ;;  %v3766_v59 = vld [vmem:[%s4828_s7 + $0xf0] sm:$0xff]  }
 0x161   : > { %1651 = vmatpush2.bf16.msra.mxu1 %v3746_v61  ;;  %v3767_v61 = vld [vmem:[%s4828_s7 + $0xb0] sm:$0xff]  }
 0x162   : > { %1652 = vmatprep.subr.bf16.mxu1 %v3754_v0  ;;  %v3770_v0 = vld [vmem:[%s4828_s7 + $0xe8] sm:$0xff]  }
 0x165   : > { %1653 = vmatpush2.bf16.msra.mxu1 %v3752_v63  ;;  %v3764_v63 = vld [vmem:[%s4828_s7 + $0x68] sm:$0xff]  }
 0x166   : > { %3444 = vmatprep.subr.bf16.mxu1 %v3758_v4  ;;  %v3771_v4 = vld [vmem:[%s4828_s7 + $0xa8] sm:$0xff]  }
 0x1e7   : > { %v3394_v6 = vpop.f32.mrf.mxu1 }
 0x1e8   : > { %v3602_v7 = vpop.f32.mrf.mxu0 }
 0x1e9   : > { %v3395_v8 = vpop.f32.mrf.mxu1 }
 0x1ea   : > { %v3396_v10 = vadd.f32 %v3395_v8, %v3394_v6  ;;  %v1272_v11 = vpop.f32.mrf.mxu0  ;;  %v3769_v6 = vld [vmem:[%s4828_s7 + $0x20] sm:$0xff]   ;;  %v3773_v8 = vld [vmem:[%s4828_s7 + $0x18] sm:$0xff]  }
 0x1eb   : > { %v3397_v12 = vpop.f32.mrf.mxu1 }
 0x1ec   : > { %v1224_v13 = vadd.f32 %v3396_v10, %v2961_v9  ;;  %v3603_v14 = vpop.f32.mrf.mxu0  ;;  %v3775_v10 = vld [vmem:[%s4828_s7 + $0xa0] sm:$0xff]  }
 0x1ed   : > { %v3398_v15 = vpop.f32.mrf.mxu1  ;;  %v3779_v14 = vld [vmem:[%s4828_s7 + $0x98] sm:$0xff]  }
 0x1ee   : > { %v1273_v16 = vadd.f32 %v1272_v11, %v1224_v13  ;;  %v3399_v17 = vadd.f32 %v3398_v15, %v3397_v12  ;;  %v1275_v21 = vpop.f32.mrf.mxu0  ;;  %v3776_v11 = vld [vmem:[%s4828_s7 + $0x50] sm:$0xff]   ;;  %v3778_v13 = vld [vmem:[%s4828_s7 + $0xd8] sm:$0xff]   ;;  %v3780_v15 = vld [vmem:[%s4828_s7 + $0x48] sm:$0xff]  }
 0x1ef   : > { %v3400_v18 = vpop.f32.mrf.mxu1  ;;  %v3777_v12 = vld [vmem:[%s4828_s7 + $0x10] sm:$0xff]  }
 0x1f0   : > { %v1287_v19 = vmax.f32 %v1273_v16, 0.0  ;;  %v1227_v20 = vadd.f32 %v3399_v17, %v2961_v9  ;;  %v3781_v16 = vld [vmem:[%s4828_s7 + $0x8] sm:$0xff]   ;;  %v3782_v17 = vld [vmem:[%s4828_s7 + $0xd0] sm:$0xff]  }
 0x1f1   : > { %v3401_v22 = vpop.f32.mrf.mxu1 }
 0x1f2   : > { %v1276_v23 = vadd.f32 %v1275_v21, %v1227_v20  ;;  %v3402_v24 = vadd.f32 %v3401_v22, %v3400_v18  ;;  %v1295_v26 = vrot.slane %v1287_v19, 2  ;;  %v3783_v18 = vld [vmem:[%s4828_s7 + $0x90] sm:$0xff]   ;;  %v3785_v20 = vld [vmem:[%s4828_s7] sm:$0xff]   ;;  %v3786_v21 = vld [vmem:[%s4828_s7 + $0xc8] sm:$0xff]  }
 0x1f3   : > { %v3403_v25 = vpop.f32.mrf.mxu1  ;;  %v3787_v22 = vld [vmem:[%s4828_s7 + $0x88] sm:$0xff]  }
 0x1f4   : > { %v1288_v28 = vmax.f32 %v1276_v23, 0.0  ;;  %v1232_v30 = vadd.f32 %v3402_v24, %v2961_v9  ;;  %v1302_v34 = vsel %vm983_vm3, %v1298_v27, %v1295_v26  ;;  %v3774_v9 = vld [vmem:[%s4828_s7 + $0xe0] sm:$0xff]   ;;  %v3788_v23 = vld [vmem:[%s4828_s7 + $0x1f8] sm:$0xff]  }
 0x1f5   : > { %v3404_v31 = vpop.f32.mrf.mxu1  ;;  %v1306_v39 = vmax.f32 %v1302_v34, 0.0  ;;  %v3790_v24 = vld [vmem:[%s4828_s7 + $0xc0] sm:$0xff]  }
 0x1f6   : > { %v1296_v32 = vrot.slane %v1288_v28, 2  ;;  %v1281_v33 = vadd.f32 %v3602_v7, %v1232_v30  ;;  %v3772_v7 = vld [vmem:[%s4828_s7 + $0x58] sm:$0xff]   ;;  %v3791_v25 = vld [vmem:[%s4828_s7 + $0x80] sm:$0xff]  }
 0x1f7   : > { %v1310_v46 = vrot.slane %v1306_v39, 4  ;;  %v1370_v30 = vld [vmem:[%s4827_s6] sm:$0x3] }
 0x1f8   : > { %v1289_v35 = vmax.f32 %v1281_v33, 0.0  ;;  %v1301_v36 = vsel %vm983_vm3, %v1295_v26, %v1296_v32  ;;  %v3794_v26 = vld [vmem:[%s4828_s7 + $0x178] sm:$0xff]  }
 0x1f9   : > { %v1303_v37 = vmax.f32 %v1287_v19, %v1301_v36  ;;  %v3784_v19 = vld [vmem:[%s4828_s7 + $0x40] sm:$0xff]  }
 0x1fa   : > { %v1297_v38 = vrot.slane %v1289_v35, 2 }
 0x1fb   : > { %v1307_v45 = vrot.slane %v1303_v37, 4 }
 0x1fc   : > { %v1299_v40 = vsel %vm983_vm3, %v1297_v38, %v1298_v27  ;;  %v1300_v42 = vsel %vm983_vm3, %v1296_v32, %v1297_v38  ;;  %v1378_v27 = vsub.s32 1, %v4013_v29 }
 0x1fd   : > { %v1305_v43 = vmax.f32 %v1289_v35, %v1299_v40  ;;  %v1304_v44 = vmax.f32 %v1288_v28, %v1300_v42  ;;  %v1315_v51 = vsel %vm1311_vm4, %v1310_v46, %v1307_v45  ;;  %v1374_v28 = vsub.s32 0, %v4013_v29 }
 0x1fe   : > { %v1379_v31 = vrot.slane %v1370_v30, %v1378_v27 }
 0x1ff   : > { %v1309_v47 = vrot.slane %v1305_v43, 4  ;;  %v1308_v48 = vrot.slane %v1304_v44, 4  ;;  %v1318_v49 = vpack.c.bf16 %v1304_v44, %v1303_v37  ;;  %v1319_v57 = vpack.c.bf16 %v1306_v39, %v1305_v43 }
 0x200   : > { %v1375_v32 = vrot.slane %v1370_v30, %v1374_v28  ;;  %v3797_v28 = vld [vmem:[%s4828_s7 + $0x1a8] sm:$0xff]  }
 0x201   : > { %v1314_v50 = vsel %vm1311_vm4, %v1307_v45, %v1308_v48  ;;  %1654 = vmatprep.mubr.bf16.mxu1 %v1318_v49  ;;  %v1313_v52 = vsel %vm1311_vm4, %v1308_v48, %v1309_v47  ;;  %v1312_v62 = vsel %vm1311_vm4, %v1309_v47, %v1310_v46 }
 0x202   : > { %v1316_v53 = vpack.c.bf16 %v1314_v50, %v1315_v51  ;;  %v1320_v54 = vpack.c.bf16 %v1313_v52, %v1314_v50  ;;  %v1317_v1 = vpack.c.bf16 %v1312_v62, %v1313_v52  ;;  %v1321_v2 = vpack.c.bf16 %v1315_v51, %v1312_v62 }
 0x204   : > { %1655 = vmatmul.mubr.bf16.vlgmr.msra.gmra.mxu1 %v1316_v53  ;;  %1708 = vmatmul.mubr.bf16.vlgmr.msra.gmra.mxu0 %v1320_v54 }
 0x205   : > { %1664 = vmatprep.mubr.bf16.mxu1 %v1319_v57  ;;  %1717 = vmatprep.mubr.bf16.mxu0 %v3867_v3  ;;  %v3765_v3 = vld [vmem:[%s4828_s7 + $0x28] sm:$0xff]  }
 0x206   : > { %3445 = vmatpush3.bf16.msra.mxu1 %v3759_v55  ;;  %3417 = vmatpush3.bf16.msra.mxu0 %v3763_v56 }
 0x207   : > { %3446 = vmatprep.subr.bf16.mxu1 %v3760_v58  ;;  %3418 = vmatprep.subr.bf16.mxu0 %v3766_v59 }
 0x20a   : > { %3447 = vmatpush3.bf16.msra.mxu1 %v3761_v60  ;;  %3419 = vmatpush3.bf16.msra.mxu0 %v3767_v61 }
 0x20b   : > { %3448 = vmatprep.subr.bf16.mxu1 %v3764_v63  ;;  %3420 = vmatprep.subr.bf16.mxu0 %v3770_v0 }
 0x20c   : > { %1665 = vmatmul.mubr.bf16.gmra.mxu1 %v1317_v1  ;;  %1718 = vmatmul.mubr.bf16.gmra.mxu0 %v1321_v2  ;;  %v3789_v1 = vld [vmem:[%s4828_s7 + $0x1b8] sm:$0xff]  }
 0x20e   : > { %3449 = vmatpush3.bf16.msra.mxu1 %v3765_v3  ;;  %3421 = vmatpush3.bf16.msra.mxu0 %v3771_v4 }
 0x20f   : > { %3450 = vmatprep.subr.bf16.mxu1 %v3768_v5  ;;  %3422 = vmatprep.subr.bf16.mxu0 %v3774_v9 }
 0x212   : > { %3451 = vmatpush3.bf16.msra.mxu1 %v3769_v6  ;;  %3423 = vmatpush3.bf16.msra.mxu0 %v3775_v10  ;;  %v3792_v6 = vld [vmem:[%s4828_s7 + $0x1f0] sm:$0xff]  }
 0x213   : > { %3452 = vmatprep.subr.bf16.mxu1 %v3772_v7  ;;  %3424 = vmatprep.subr.bf16.mxu0 %v3778_v13 }
 0x216   : > { %3453 = vmatpush3.bf16.msra.mxu1 %v3773_v8  ;;  %3425 = vmatpush3.bf16.msra.mxu0 %v3779_v14 }
 0x217   : > { %3454 = vmatprep.subr.bf16.mxu1 %v3776_v11  ;;  %3426 = vmatprep.subr.bf16.mxu0 %v3782_v17  ;;  %v3793_v11 = vld [vmem:[%s4828_s7 + $0x1b0] sm:$0xff]  }
 0x21a   : > { %3455 = vmatpush3.bf16.msra.mxu1 %v3777_v12  ;;  %3427 = vmatpush3.bf16.msra.mxu0 %v3783_v18 }
 0x21b   : > { %3456 = vmatprep.subr.bf16.mxu1 %v3780_v15  ;;  %3428 = vmatprep.subr.bf16.mxu0 %v3786_v21  ;;  %v3796_v15 = vld [vmem:[%s4828_s7 + $0x1e8] sm:$0xff]  }
 0x21e   : > { %3457 = vmatpush3.bf16.msra.mxu1 %v3781_v16  ;;  %3429 = vmatpush3.bf16.msra.mxu0 %v3787_v22  ;;  %v1786_v16 = vrot.slane %v3866_v41, 4 }
 0x21f   : > { %3458 = vmatprep.subr.bf16.mxu1 %v3784_v19  ;;  %3430 = vmatprep.subr.bf16.mxu0 %v3790_v24  ;;  %v3795_v24 = vld [vmem:[%s4828_s7 + $0x138] sm:$0xff]  }
 0x222   : > { %3459 = vmatpush3.bf16.msra.mxu1 %v3785_v20  ;;  %3431 = vmatpush3.bf16.msra.mxu0 %v3791_v25 }
 0x223   : > { %3500 = vmatprep.subr.bf16.mxu1 %v3788_v23  ;;  %3472 = vmatprep.subr.bf16.mxu0 %v3794_v26 }
 0x2c4   : > { %v1656_v33 = vpop.f32.mrf.mxu1  ;;  %v1709_v34 = vpop.f32.mrf.mxu0 }
 0x2c5   : > { %v1657_v38 = vadd.f32 %v1656_v33, %v1375_v32 }
 0x2c6   : > { %v1658_v35 = vpop.f32.mrf.mxu1  ;;  %v1711_v36 = vpop.f32.mrf.mxu0 }
 0x2c7   : > { %v1659_v37 = vadd.f32 %v1658_v35, %v1379_v31  ;;  %v1710_v48 = vadd.f32 %v1709_v34, %v1657_v38  ;;  %v3799_v34 = vld [vmem:[%s4828_s7 + $0x130] sm:$0xff]   ;;  %v3801_v35 = vld [vmem:[%s4828_s7 + $0x1a0] sm:$0xff]   ;;  %v3804_v38 = vld [vmem:[%s4828_s7 + $0x1d8] sm:$0xff]  }
 0x2c8   : > { %v1660_v39 = vpop.f32.mrf.mxu1  ;;  %v1713_v40 = vpop.f32.mrf.mxu0 }
 0x2c9   : > { %v1661_v42 = vadd.f32 %v1660_v39, %v1375_v32  ;;  %v1712_v45 = vadd.f32 %v1711_v36, %v1659_v37  ;;  %v4529_v59 = vmax.f32 %v1710_v48, 0.0  ;;  %v3802_v36 = vld [vmem:[%s4828_s7 + $0x168] sm:$0xff]   ;;  %v3810_v48 = vld [vmem:[%s4828_s7 + $0x158] sm:$0xff]  }
 0x2ca   : > { %v1662_v43 = vpop.f32.mrf.mxu1  ;;  %v1715_v44 = vpop.f32.mrf.mxu0 }
 0x2cb   : > { %v1714_v46 = vadd.f32 %v1713_v40, %v1661_v42  ;;  %v1663_v47 = vadd.f32 %v1662_v43, %v1379_v31  ;;  %v4525_v56 = vmax.f32 %v1712_v45, 0.0  ;;  %v1780_v17 = vrot.slane %v4529_v59, 4  ;;  %v3803_v40 = vld [vmem:[%s4828_s7 + $0x128] sm:$0xff]   ;;  %v3805_v43 = vld [vmem:[%s4828_s7 + $0x198] sm:$0xff]   ;;  %v3808_v45 = vld [vmem:[%s4828_s7 + $0x1d0] sm:$0xff]  }
 0x2cc   : > { %v1666_v49 = vpop.f32.mrf.mxu1  ;;  %v1719_v50 = vpop.f32.mrf.mxu0 }
 0x2cd   : > { %v1716_v51 = vadd.f32 %v1715_v44, %v1663_v47  ;;  %v1667_v52 = vadd.f32 %v1666_v49, %v1375_v32  ;;  %v4523_v53 = vmax.f32 %v1714_v46, 0.0  ;;  %v1781_v12 = vrot.slane %v4525_v56, 4  ;;  %v3800_v32 = vld [vmem:[%s4828_s7 + $0x1e0] sm:$0xff]   ;;  %v3809_v47 = vld [vmem:[%s4828_s7 + $0x190] sm:$0xff]   ;;  %v3812_v49 = vld [vmem:[%s4828_s7 + $0x1c8] sm:$0xff]  }
 0x2ce   : > { %v1668_v54 = vpop.f32.mrf.mxu1  ;;  %v1721_v55 = vpop.f32.mrf.mxu0  ;;  %v4631_v39 = vsel %vm1311_vm4, %v1786_v16, %v1780_v17  ;;  %v3806_v44 = vld [vmem:[%s4828_s7 + $0x160] sm:$0xff]  }
 0x2cf   : > { %v4527_v57 = vmax.f32 %v1716_v51, 0.0  ;;  %v1720_v58 = vadd.f32 %v1719_v50, %v1667_v52  ;;  %v1669_v60 = vadd.f32 %v1668_v54, %v1379_v31  ;;  %v4542_v2 = vpack.c.bf16 %v4523_v53, %v4529_v59  ;;  %v3798_v31 = vld [vmem:[%s4828_s7 + $0x170] sm:$0xff]   ;;  %v3807_v46 = vld [vmem:[%s4828_s7 + $0x120] sm:$0xff]   ;;  %v3811_v50 = vld [vmem:[%s4828_s7 + $0x118] sm:$0xff]  }
 0x2d0   : > { %v1670_v61 = vpop.f32.mrf.mxu1  ;;  %v1723_v62 = vpop.f32.mrf.mxu0  ;;  %v1782_v10 = vrot.slane %v4523_v53, 4  ;;  %v4593_v26 = vsel %vm1311_vm4, %v1786_v16, %v1781_v12  ;;  %v3813_v51 = vld [vmem:[%s4828_s7 + $0x188] sm:$0xff]   ;;  %v3814_v52 = vld [vmem:[%s4828_s7 + $0x150] sm:$0xff]   ;;  %v3816_v54 = vld [vmem:[%s4828_s7 + $0x1c0] sm:$0xff]  }
 0x2d1   : > { %v4531_v63 = vmax.f32 %v1720_v58, 0.0  ;;  %v4535_v0 = vpack.c.bf16 %v4527_v57, %v4525_v56  ;;  %v1722_v3 = vadd.f32 %v1721_v55, %v1669_v60  ;;  %v1783_v8 = vrot.slane %v4527_v57, 4  ;;  %v3815_v55 = vld [vmem:[%s4828_s7 + $0x110] sm:$0xff]   ;;  %v3818_v58 = vld [vmem:[%s4828_s7 + $0x148] sm:$0xff]   ;;  %v3820_v60 = vld [vmem:[%s4828_s7 + $0x2f8] sm:$0xff]  }
 0x2d2   : > { %v1672_v4 = vpop.f32.mrf.mxu1  ;;  %v1725_v5 = vpop.f32.mrf.mxu0  ;;  %v4579_v22 = vsel %vm1311_vm4, %v1780_v17, %v1782_v10  ;;  %v3819_v61 = vld [vmem:[%s4828_s7 + $0x108] sm:$0xff]   ;;  %v3821_v62 = vld [vmem:[%s4828_s7 + $0x2b8] sm:$0xff]  }
 0x2d3   : > { %v1784_v7 = vrot.slane %v4531_v63, 4  ;;  %2103 = vmatprep.mubr.bf16.mxu1 %v4535_v0  ;;  %v1733_v9 = vmax.f32 %v1722_v3, 0.0  ;;  %v4573_v20 = vsel %vm1311_vm4, %v1781_v12, %v1783_v8  ;;  %v4597_v27 = vpack.c.bf16 %v3866_v41, %v4531_v63  ;;  %v3822_v3 = vld [vmem:[%s4828_s7 + $0x140] sm:$0xff]   ;;  %v3824_v4 = vld [vmem:[%s4828_s7 + $0x2f0] sm:$0xff]   ;;  %v3829_v12 = vld [vmem:[%s4828_s7 + $0x2a8] sm:$0xff]  }
 0x2d4   : > { %2104 = vmatmul.mubr.bf16.vlgmr.msra.gmra.mxu1 %v4542_v2  ;;  %v2300_v5 = vpack.c.bf16 %v4573_v20, %v4593_v26  ;;  %v3834_v17 = vld [vmem:[%s4828_s7 + $0x268] sm:$0xff]  }
 0x2d5   : > { %3501 = vmatpush3.bf16.msra.mxu1 %v3789_v1  ;;  %v1785_v13 = vrot.slane %v1733_v9, 4  ;;  %v4557_v14 = vpack.c.bf16 %v3866_v41, %v1733_v9  ;;  %v4566_v18 = vsel %vm1311_vm4, %v1782_v10, %v1784_v7  ;;  %v1788_v37 = vsel %vm1311_vm4, %v1784_v7, %v1786_v16  ;;  %v3825_v7 = vld [vmem:[%s4828_s7 + $0x2b0] sm:$0xff]  }
 0x2d6   : > { %3502 = vmatprep.subr.bf16.mxu1 %v3792_v6  ;;  %v4589_v25 = vpack.c.bf16 %v4566_v18, %v4579_v22  ;;  %v4637_v42 = vpack.c.bf16 %v4631_v39, %v1788_v37  ;;  %v2118_v29 = vpack.c.bf16 %v1733_v9, %v4527_v57  ;;  %v3817_v57 = vld [vmem:[%s4828_s7 + $0x180] sm:$0xff]   ;;  %v2297_v1 = vpack.c.bf16 %v1788_v37, %v4566_v18  ;;  %v3828_v9 = vld [vmem:[%s4828_s7 + $0x2e8] sm:$0xff]   ;;  %v3836_v18 = vld [vmem:[%s4828_s7 + $0x2d8] sm:$0xff]  }
 0x2d7   : > { %2110 = vmatprep.mubr.bf16.mxu1 %v4557_v14  ;;  %v1791_v19 = vsel %vm1311_vm4, %v1783_v8, %v1785_v13  ;;  %v1789_v21 = vsel %vm1311_vm4, %v1785_v13, %v1786_v16  ;;  %v3823_v6 = vld [vmem:[%s4828_s7 + $0x100] sm:$0xff]   ;;  %v3826_v8 = vld [vmem:[%s4828_s7 + $0x278] sm:$0xff]   ;;  %v2117_v10 = vpack.c.bf16 %v4531_v63, %v4523_v53  ;;  %v2120_v13 = vpack.c.bf16 %v4525_v56, %v3866_v41  ;;  %v3830_v53 = vld [vmem:[%s4828_s7 + $0x270] sm:$0xff]  }
 0x2d8   : > { %v4582_v23 = vpack.c.bf16 %v1791_v19, %v4573_v20  ;;  %v4604_v30 = vpack.c.bf16 %v4593_v26, %v1789_v21  ;;  %v2298_v33 = vpack.c.bf16 %v1789_v21, %v1791_v19  ;;  %v3832_v63 = vld [vmem:[%s4828_s7 + $0x2e0] sm:$0xff]   ;;  %v3831_v56 = vld [vmem:[%s4828_s7 + $0x230] sm:$0xff]   ;;  %v2119_v19 = vpack.c.bf16 %v4529_v59, %v3866_v41  ;;  %v3835_v20 = vld [vmem:[%s4828_s7 + $0x228] sm:$0xff]  }
 0x2d9   : > { %3503 = vmatpush3.bf16.msra.mxu1 %v3793_v11  ;;  %v3827_v11 = vld [vmem:[%s4828_s7 + $0x238] sm:$0xff]   ;;  %v3833_v16 = vld [vmem:[%s4828_s7 + $0x2a0] sm:$0xff]   ;;  %v3841_v59 = vld [vmem:[%s4828_s7 + $0x290] sm:$0xff]  }
 0x2da   : > { %3504 = vmatprep.subr.bf16.mxu1 %v3796_v15  ;;  %1961 = vmatprep.mubr.bf16.mxu0 %v4582_v23  ;;  %v2299_v15 = vpack.c.bf16 %v4579_v22, %v4631_v39  ;;  %v3837_v21 = vld [vmem:[%s4828_s7 + $0x298] sm:$0xff]   ;;  %v3838_v22 = vld [vmem:[%s4828_s7 + $0x260] sm:$0xff]  }
 0x2db   : > { %1962 = vmatmul.mubr.bf16.vlgmr.msra.gmra.mxu0 %v4589_v25  ;;  %v3839_v41 = vld [vmem:[%s4828_s7 + $0x220] sm:$0xff]   ;;  %v3842_v26 = vld [vmem:[%s4828_s7 + $0x258] sm:$0xff]  }
 0x2dc   : > { %2111 = vmatmul.mubr.bf16.gmra.mxu1 %v4597_v27  ;;  %3473 = vmatpush3.bf16.msra.mxu0 %v3795_v24  ;;  %v3840_v24 = vld [vmem:[%s4828_s7 + $0x2d0] sm:$0xff]   ;;  %v3852_v37 = vld [vmem:[%s4828_s7 + $0x240] sm:$0xff]  }
 0x2dd   : > { %1968 = vmatprep.mubr.bf16.mxu0 %v4604_v30  ;;  %3505 = vmatpush3.bf16.msra.mxu1 %v3797_v28  ;;  %v3843_v28 = vld [vmem:[%s4828_s7 + $0x218] sm:$0xff]  }
 0x2de   : > { %2462 = vmatprep.mubr.bf16.mxu1 %v2298_v33  ;;  %3474 = vmatprep.subr.bf16.mxu0 %v3798_v31  ;;  %v3846_v31 = vld [vmem:[%s4828_s7 + $0x250] sm:$0xff]  }
 0x2df   : > { %3506 = vmatprep.subr.bf16.mxu1 %v3800_v32  ;;  %v3848_v32 = vld [vmem:[%s4828_s7 + $0x2c0] sm:$0xff]   ;;  %v3847_v33 = vld [vmem:[%s4828_s7 + $0x210] sm:$0xff]  }
 0x2e0   : > { %3475 = vmatpush3.bf16.msra.mxu0 %v3799_v34  ;;  %v3849_v34 = vld [vmem:[%s4828_s7 + $0x280] sm:$0xff]  }
 0x2e1   : > { %3507 = vmatpush3.bf16.msra.mxu1 %v3801_v35  ;;  %3476 = vmatprep.subr.bf16.mxu0 %v3802_v36  ;;  %v3850_v35 = vld [vmem:[%s4828_s7 + $0x248] sm:$0xff]  }
 0x2e2   : > { %3508 = vmatprep.subr.bf16.mxu1 %v3804_v38  ;;  %v3851_v36 = vld [vmem:[%s4828_s7 + $0x208] sm:$0xff]   ;;  %v3853_v38 = vld [vmem:[%s4828_s7 + $0x200] sm:$0xff]  }
 0x2e3   : > { %1969 = vmatmul.mubr.bf16.gmra.mxu0 %v4637_v42 }
 0x2e4   : > { %3477 = vmatpush3.bf16.msra.mxu0 %v3803_v40  ;;  %2282 = vmatprep.mubr.bf16.mxu0 %v2118_v29 }
 0x2e5   : > { %3509 = vmatpush3.bf16.msra.mxu1 %v3805_v43  ;;  %3478 = vmatprep.subr.bf16.mxu0 %v3806_v44 }
 0x2e6   : > { %3510 = vmatprep.subr.bf16.mxu1 %v3808_v45 }
 0x2e8   : > { %3479 = vmatpush3.bf16.msra.mxu0 %v3807_v46 }
 0x2e9   : > { %3511 = vmatpush3.bf16.msra.mxu1 %v3809_v47  ;;  %3480 = vmatprep.subr.bf16.mxu0 %v3810_v48 }
 0x2ea   : > { %3512 = vmatprep.subr.bf16.mxu1 %v3812_v49 }
 0x2ec   : > { %3481 = vmatpush3.bf16.msra.mxu0 %v3811_v50 }
 0x2ed   : > { %3513 = vmatpush3.bf16.msra.mxu1 %v3813_v51  ;;  %3482 = vmatprep.subr.bf16.mxu0 %v3814_v52 }
 0x2ee   : > { %3514 = vmatprep.subr.bf16.mxu1 %v3816_v54 }
 0x2f0   : > { %3483 = vmatpush3.bf16.msra.mxu0 %v3815_v55 }
 0x2f1   : > { %3515 = vmatpush3.bf16.msra.mxu1 %v3817_v57  ;;  %3484 = vmatprep.subr.bf16.mxu0 %v3818_v58 }
 0x2f2   : > { %3556 = vmatprep.subr.bf16.mxu1 %v3820_v60 }
 0x2f4   : > { %3485 = vmatpush3.bf16.msra.mxu0 %v3819_v61  ;;  %2463 = vmatmul.mubr.bf16.vlgmr.msra.gmra.mxu1 %v2297_v1 }
 0x2f5   : > { %2469 = vmatprep.mubr.bf16.mxu1 %v2300_v5  ;;  %3557 = vmatpush3.bf16.msra.mxu1 %v3821_v62 }
 0x2f6   : > { %3486 = vmatprep.subr.bf16.mxu0 %v3822_v3  ;;  %3558 = vmatprep.subr.bf16.mxu1 %v3824_v4 }
 0x2f8   : > { %3487 = vmatpush3.bf16.msra.mxu0 %v3823_v6 }
 0x2f9   : > { %3559 = vmatpush3.bf16.msra.mxu1 %v3825_v7  ;;  %3528 = vmatprep.subr.bf16.mxu0 %v3826_v8 }
 0x2fa   : > { %3560 = vmatprep.subr.bf16.mxu1 %v3828_v9 }
 0x2fb   : > { %2283 = vmatmul.mubr.bf16.vlgmr.msra.gmra.mxu0 %v2117_v10 }
 0x2fc   : > { %2289 = vmatprep.mubr.bf16.mxu0 %v2120_v13  ;;  %2470 = vmatmul.mubr.bf16.gmra.mxu1 %v2299_v15 }
 0x2fd   : > { %3529 = vmatpush3.bf16.msra.mxu0 %v3827_v11  ;;  %3561 = vmatpush3.bf16.msra.mxu1 %v3829_v12 }
 0x2fe   : > { %2814 = vmatprep.mubr.bf16.mxu1 %v4604_v30  ;;  %3530 = vmatprep.subr.bf16.mxu0 %v3830_v53  ;;  %v3845_v30 = vld [vmem:[%s4828_s7 + $0x288] sm:$0xff]  }
 0x2ff   : > { %3562 = vmatprep.subr.bf16.mxu1 %v3832_v63 }
 0x301   : > { %3531 = vmatpush3.bf16.msra.mxu0 %v3831_v56  ;;  %3563 = vmatpush3.bf16.msra.mxu1 %v3833_v16 }
 0x302   : > { %3532 = vmatprep.subr.bf16.mxu0 %v3834_v17  ;;  %3564 = vmatprep.subr.bf16.mxu1 %v3836_v18 }
 0x303   : > { %2290 = vmatmul.mubr.bf16.gmra.mxu0 %v2119_v19 }
 0x304   : > { %2638 = vmatprep.mubr.bf16.mxu0 %v4557_v14  ;;  %v3844_v14 = vld [vmem:[%s4828_s7 + $0x2c8] sm:$0xff]  }
 0x305   : > { %3533 = vmatpush3.bf16.msra.mxu0 %v3835_v20  ;;  %3565 = vmatpush3.bf16.msra.mxu1 %v3837_v21 }
 0x306   : > { %3534 = vmatprep.subr.bf16.mxu0 %v3838_v22  ;;  %3566 = vmatprep.subr.bf16.mxu1 %v3840_v24 }
 0x309   : > { %3535 = vmatpush3.bf16.msra.mxu0 %v3839_v41  ;;  %3567 = vmatpush3.bf16.msra.mxu1 %v3841_v59 }
 0x30a   : > { %3536 = vmatprep.subr.bf16.mxu0 %v3842_v26  ;;  %3568 = vmatprep.subr.bf16.mxu1 %v3844_v14 }
 0x30d   : > { %3537 = vmatpush3.bf16.msra.mxu0 %v3843_v28  ;;  %3569 = vmatpush3.bf16.msra.mxu1 %v3845_v30  ;;  %v3290_v28 = vld [vmem:[%s4829_s8] ss:$0 sm:$0xff] }
 0x30e   : > { %3538 = vmatprep.subr.bf16.mxu0 %v3846_v31  ;;  %3570 = vmatprep.subr.bf16.mxu1 %v3848_v32 }
 0x311   : > { %3539 = vmatpush3.bf16.msra.mxu0 %v3847_v33  ;;  %3571 = vmatpush3.bf16.msra.mxu1 %v3849_v34 }
 0x312   : > { %3540 = vmatprep.subr.bf16.mxu0 %v3850_v35 }
 0x314   : > { %2815 = vmatmul.mubr.bf16.vlgmr.msra.gmra.mxu1 %v4637_v42 }
 0x315   : > { %3541 = vmatpush3.bf16.msra.mxu0 %v3851_v36  ;;  %2821 = vmatprep.mubr.bf16.mxu1 %v4582_v23 }
 0x316   : > { %3542 = vmatprep.subr.bf16.mxu0 %v3852_v37 }
 0x319   : > { %3543 = vmatpush3.bf16.msra.mxu0 %v3853_v38 }
 0x31c   : > { %2639 = vmatmul.mubr.bf16.vlgmr.msra.gmra.mxu0 %v4597_v27  ;;  %2822 = vmatmul.mubr.bf16.gmra.mxu1 %v4589_v25 }
 0x31d   : > { %2645 = vmatprep.mubr.bf16.mxu0 %v4535_v0 }
 0x324   : > { %2646 = vmatmul.mubr.bf16.gmra.mxu0 %v4542_v2 }
 0x394   : > { %v3460_v39 = vpop.f32.mrf.mxu1 }
 0x396   : > { %v3461_v40 = vpop.f32.mrf.mxu1 }
 0x397   : > { %v3462_v42 = vadd.f32 %v3461_v40, %v3460_v39 }
 0x398   : > { %v3463_v43 = vpop.f32.mrf.mxu1 }
 0x39a   : > { %v3464_v44 = vpop.f32.mrf.mxu1 }
 0x39b   : > { %v3432_v23 = vpop.f32.mrf.mxu0 }
 0x39c   : > { %v3466_v29 = vpop.f32.mrf.mxu1 }
 0x39d   : > { %v3433_v45 = vpop.f32.mrf.mxu0 }
 0x39e   : > { %v3467_v46 = vpop.f32.mrf.mxu1  ;;  %v3434_v10 = vadd.f32 %v3433_v45, %v3432_v23 }
 0x39f   : > { %v3435_v47 = vpop.f32.mrf.mxu0 }
 0x3a0   : > { %v3469_v48 = vpop.f32.mrf.mxu1  ;;  %v2106_v15 = vadd.f32 %v3462_v42, %v3434_v10 }
 0x3a1   : > { %v3436_v49 = vpop.f32.mrf.mxu0 }
 0x3a2   : > { %v3470_v50 = vpop.f32.mrf.mxu1 }
 0x3a3   : > { %v3438_v27 = vpop.f32.mrf.mxu0 }
 0x3a5   : > { %v3439_v51 = vpop.f32.mrf.mxu0 }
 0x3a7   : > { %v3441_v25 = vpop.f32.mrf.mxu0 }
 0x3a9   : > { %v3442_v52 = vpop.f32.mrf.mxu0 }
 0x3b4   : > { %v3516_v0 = vpop.f32.mrf.mxu1 }
 0x3b6   : > { %v3517_v54 = vpop.f32.mrf.mxu1 }
 0x3b7   : > { %v3518_v17 = vadd.f32 %v3517_v54, %v3516_v0 }
 0x3b8   : > { %v3519_v2 = vpop.f32.mrf.mxu1 }
 0x3ba   : > { %v3520_v55 = vpop.f32.mrf.mxu1 }
 0x3bb   : > { %v3488_v57 = vpop.f32.mrf.mxu0 }
 0x3bc   : > { %v3522_v58 = vpop.f32.mrf.mxu1 }
 0x3bd   : > { %v3489_v60 = vpop.f32.mrf.mxu0 }
 0x3be   : > { %v3523_v61 = vpop.f32.mrf.mxu1  ;;  %v3490_v12 = vadd.f32 %v3489_v60, %v3488_v57 }
 0x3bf   : > { %v3491_v62 = vpop.f32.mrf.mxu0 }
 0x3c0   : > { %v3525_v1 = vpop.f32.mrf.mxu1  ;;  %v2296_v63 = vadd.f32 %v3490_v12, %v2106_v15 }
 0x3c1   : > { %v3492_v3 = vpop.f32.mrf.mxu0 }
 0x3c2   : > { %v3526_v4 = vpop.f32.mrf.mxu1  ;;  %v2476_v20 = vadd.f32 %v3518_v17, %v2296_v63 }
 0x3c3   : > { %v3494_v5 = vpop.f32.mrf.mxu0 }
 0x3c5   : > { %v3495_v6 = vpop.f32.mrf.mxu0 }
 0x3c7   : > { %v3497_v7 = vpop.f32.mrf.mxu0 }
 0x3c9   : > { %v3498_v8 = vpop.f32.mrf.mxu0 }
 0x3d4   : > { %v3572_v9 = vpop.f32.mrf.mxu1 }
 0x3d6   : > { %v3573_v11 = vpop.f32.mrf.mxu1 }
 0x3d7   : > { %v3574_v41 = vadd.f32 %v3573_v11, %v3572_v9 }
 0x3d8   : > { %v3575_v13 = vpop.f32.mrf.mxu1 }
 0x3da   : > { %v3576_v53 = vpop.f32.mrf.mxu1 }
 0x3dc   : > { %v3544_v56 = vpop.f32.mrf.mxu0  ;;  %v3578_v16 = vpop.f32.mrf.mxu1 }
 0x3de   : > { %v3545_v18 = vpop.f32.mrf.mxu0  ;;  %v3579_v19 = vpop.f32.mrf.mxu1 }
 0x3df   : > { %v3546_v21 = vadd.f32 %v3545_v18, %v3544_v56 }
 0x3e0   : > { %v3547_v22 = vpop.f32.mrf.mxu0  ;;  %v3581_v24 = vpop.f32.mrf.mxu1 }
 0x3e1   : > { %v2652_v59 = vadd.f32 %v3546_v21, %v2476_v20 }
 0x3e2   : > { %v3548_v26 = vpop.f32.mrf.mxu0  ;;  %v3582_v14 = vpop.f32.mrf.mxu1 }
 0x3e3   : > { %v2828_v30 = vadd.f32 %v3574_v41, %v2652_v59 }
 0x3e4   : > { %v3550_v31 = vpop.f32.mrf.mxu0 }
 0x3e5   : > { %v2836_v32 = vadd.f32 %v3290_v28, %v2828_v30 }
 0x3e6   : > { %v3551_v33 = vpop.f32.mrf.mxu0 }
 0x3e7   : > { %v2838_v34 = vsel %vm2837_vm5, %v2836_v32, -inf }
 0x3e8   : > { %v3553_v35 = vpop.f32.mrf.mxu0  ;;  %2839 = vmax.xlane.f32.xlu0 %v2838_v34 }
 0x3ea   : > { %v3554_v36 = vpop.f32.mrf.mxu0 }
 0x471   : > { %v2840_v37 = vpop.xlane.xlu0 %2839 }
 0x472   : > { %v2841_v38 = vsub.f32 %v2836_v32, %v2840_v37 }
 0x474   : > { %v2842_v39 = vmul.f32 1.442695, %v2841_v38 }
 0x476   : > { %3854 = vpow2.f32 %v2842_v39 }
 0x483   : > { %v3855_v40 = vpop.eup %3854 }
 0x484   : > { %v2844_v42 = vsel %vm2837_vm5, %v3855_v40, 0.0 }
 0x485   : > { %2845 = vadd.xlane.f32.xlu0 %v2844_v42 }
 0x50e   : > { %v2846_v43 = vpop.xlane.xlu0 %2845 }
 0x50f   : > { %3856 = vrcp.f32 %v2846_v43 }
 0x51c   : > { %v3857_v44 = vpop.eup %3856 }
 0x51d   : > { %v2848_v23 = vmul.f32 %v3857_v44, %v3855_v40 }
 0x51f   : > { %2849 = vst.msk [vmem:[%s335_s23] sm:$0xff] %vm2837_vm5, %v2848_v23 }
 0x520 PF: > { %s19_s30 = sadd.s32 1, %s3864_s30  }
 0x521   : > { %p16_p5 = scmp.ge.s32.totalorder %s19_s30, 4  }
 0x523   :  { %18 = sbr.rel (!%p16_p5) target bundleno = 1 (0x1), region = 91 }

</bundles_post_ra>
